<compile_context>
chip_gen: v6e
topology: v6e:2x2x1
jax: 0.10.0
libtpu: 0.0.40
codegen_flags: <defaults>
</compile_context>

<pallas_src>
import functools
import warnings

import jax
import jax.numpy as jnp
from jax.experimental import pallas as pl
from jax.experimental.pallas import tpu as pltpu


_LANES = 128
_TARGET_BLOCK_BYTES = 4 << 20      # ~4 MiB of data per grid step
_SMALL_BYTES = 1 << 20             # below this, fused XLA jnp.where already hits roofline
_VMEM_LIMIT_BYTES = 32 * 1024 * 1024


def _round_up(x, m):
    return (x + m - 1) // m * m


def _mask_fill_kernel(mask_ref, x_ref, o_ref):
    """mask_ref: (B,) int32 in SMEM (scalar-prefetched).  x_ref/o_ref: (1, tile_r, 128)."""
    present = mask_ref[pl.program_id(0)] != 0

    @pl.when(present)
    def _copy():
        o_ref[...] = x_ref[...]

    @pl.when(jnp.logical_not(present))
    def _zero():
        o_ref[...] = jnp.zeros(o_ref.shape, o_ref.dtype)


def _zero_missing_pallas(x, m, *, alias):
    """Zero the rows of x (shape (B, ...)) whose presence flag m (shape (B,)) is 0."""
    orig_shape = x.shape
    B = orig_shape[0]
    F = 1
    for d in orig_shape[1:]:
        F *= d

    x2 = x.reshape(B, F)
    Fp = _round_up(max(F, 1), _LANES)
    if Fp != F:
        # Only needed when a *large* modality has F % 128 != 0 (rare); tiny
        # modalities never reach this function (jnp.where fallback).
        x2 = jnp.pad(x2, ((0, 0), (0, Fp - F)))
    Rp = Fp // _LANES
    x3 = x2.reshape(B, Rp, _LANES)          # contiguous reshape: free, no HBM copy

    itemsize = x.dtype.itemsize
    sub_min = max(8, 32 // itemsize)        # dtype min sublane tile: 8 f32 / 16 bf16 / 32 i8
    target_rows = max(sub_min, _TARGET_BLOCK_BYTES // (_LANES * itemsize))
    tile_r = min(Rp, _round_up(target_rows, sub_min))   # full-dim block if Rp is small
    grid = (B, pl.cdiv(Rp, tile_r))         # boundary block handled by Pallas, no row padding

    extra = {"input_output_aliases": {1: 0}} if alias else {}

    out3 = pl.pallas_call(
        _mask_fill_kernel,
        out_shape=jax.ShapeDtypeStruct((B, Rp, _LANES), x.dtype),
        grid_spec=pltpu.PrefetchScalarGridSpec(
            num_scalar_prefetch=1,
            grid=grid,
            in_specs=[pl.BlockSpec((1, tile_r, _LANES), lambda b, r, m_ref: (b, r, 0))],
            out_specs=pl.BlockSpec((1, tile_r, _LANES), lambda b, r, m_ref: (b, r, 0)),
        ),
        compiler_params=pltpu.CompilerParams(
            dimension_semantics=("parallel", "parallel"),
            vmem_limit_bytes=_VMEM_LIMIT_BYTES,
        ),
        **extra,
    )(m.astype(jnp.int32), x3)

    y2 = out3.reshape(B, Fp)
    if Fp != F:
        y2 = y2[:, :F]
    return y2.reshape(orig_shape)


_zero_missing = jax.jit(functools.partial(_zero_missing_pallas, alias=False))
_zero_missing_donated = jax.jit(
    functools.partial(_zero_missing_pallas, alias=True), donate_argnums=(0,)
)


@jax.jit
def _zero_missing_small(x, m):
    mb = (m != 0).reshape((x.shape[0],) + (1,) * (x.ndim - 1))
    return jnp.where(mb, x, jnp.zeros_like(x))


def process_batch(data, mask, *, donate=False, small_bytes=_SMALL_BYTES):
    """JAX equivalent of AbstractModel.__process_batch on pre-stacked arrays.

    data: dict key -> array of shape (B, ...); rows with mask==0 hold arbitrary
          placeholder values (they would have been None in the torch version).
    mask: dict key -> int array of shape (B,) with 0/1 presence flags.
    donate=True additionally aliases each modality's buffer into the kernel
    output (in-place zeroing; the input arrays are consumed).
    """
    out = {}
    for key, x in data.items():
        m = mask[key]
        if x.size * x.dtype.itemsize < small_bytes:
            out[key] = _zero_missing_small(x, m)
        elif donate:
            out[key] = _zero_missing_donated(x, m)
        else:
            out[key] = _zero_missing(x, m)
    return out, mask


class AbstractModelPallas:
    """Mirror of AbstractModel; abstract hooks left unimplemented."""

    def __init__(self):
        self.compiled = False  # AbstractModel has no parameters of its own.

    def process_batch(self, data, mask, **kwargs):
        return process_batch(data, mask, **kwargs)

    def forward(self, data, mask):
        # TODO(synk): forward() is abstract (raises NotImplementedError) in the PyTorch module.
        raise NotImplementedError()

    def loss(self, pred, target):
        # TODO(synk): loss() is abstract in the PyTorch module.
        raise NotImplementedError()


if __name__ == "__main__":
    key = jax.random.PRNGKey(0)
    k_img, k_seq, k_vol, k_tab = jax.random.split(key, 4)

    B = 2
    data = {
        # 2 MiB f32, F multiple of 128 -> Pallas path, no padding.
        "img": jax.random.normal(k_img, (B, 4, 256, 256), dtype=jnp.float32),
        # ~1.3 MiB f32, F % 128 != 0 -> Pallas path with feature padding.
        "seq": jax.random.normal(k_seq, (B, 333, 520), dtype=jnp.float32),
        # 1.5 MiB bf16 -> exercises the 16-row min-tile logic.
        "vol": jax.random.normal(k_vol, (B, 96, 64, 64), dtype=jnp.bfloat16),
        # Tiny -> fused XLA jnp.where fallback (no kernel launch).
        "tab": jax.random.normal(k_tab, (B, 37), dtype=jnp.float32),
    }
    mask = {
        "img": jnp.array([1, 0], dtype=jnp.int32),  # sample 1 missing
        "seq": jnp.array([1, 1], dtype=jnp.int32),
        "vol": jnp.array([0, 1], dtype=jnp.int32),  # sample 0 missing
        "tab": jnp.array([0, 1], dtype=jnp.int32),  # sample 0 missing
    }

    # Non-finite placeholders in "missing" rows exercise the exact-zero
    # substitution (a multiplicative mask would propagate NaN/Inf).
    data["img"] = data["img"].at[1].set(jnp.nan)
    data["vol"] = data["vol"].at[0].set(jnp.inf)
    data["tab"] = data["tab"].at[0].set(jnp.nan)

    # Reference semantics (zeros_like fill), computed up front.
    expected = {}
    for k, x in data.items():
        mb = mask[k].reshape((B,) + (1,) * (x.ndim - 1)) != 0
        expected[k] = jnp.where(mb, x, jnp.zeros_like(x))

    model = AbstractModelPallas()

    out, out_mask = model.process_batch(data, mask)
    jax.block_until_ready(out)
    for k in data:
        assert out[k].shape == data[k].shape and out[k].dtype == data[k].dtype, k
        assert bool(jnp.all(jnp.isfinite(out[k].astype(jnp.float32)))), f"non-finite output for {k}"
        assert bool(jnp.array_equal(out[k], expected[k])), f"mismatch for {k}"

    # Exercise the in-place (input_output_aliases + donated buffer) variant on a
    # fresh copy of the largest modality.
    img_copy = jnp.array(data["img"])
    with warnings.catch_warnings():
        warnings.simplefilter("ignore")
        out2, _ = model.process_batch({"img": img_copy}, {"img": mask["img"]}, donate=True)
    jax.block_until_ready(out2)
    assert bool(jnp.array_equal(out2["img"], expected["img"])), "mismatch for donated img"

    print("KERNEL_OK")
</pallas_src>

<mosaic_0001>
module attributes {stable_mosaic.version = 11 : i64} {
  func.func @_mask_fill_kernel(%arg0: i32, %arg1: i32, %arg2: memref<2xi32, #tpu.memory_space<smem>>, %arg3: memref<1x2048x128xf32, #tpu.memory_space<vmem>>, %arg4: memref<1x2048x128xf32, #tpu.memory_space<vmem>>) attributes {dimension_semantics = [#tpu.dimension_semantics<parallel>, #tpu.dimension_semantics<parallel>], iteration_bounds = array<i64: 2, 1>, scalar_prefetch = 1 : i64, scratch_operands = 0 : i64, tpu.core_type = #tpu.core_type<tc>, window_params = [{transform_indices = @transform_0, window_bounds = array<i64: 1, 2048, 128>}, {transform_indices = @transform_1, window_bounds = array<i64: 1, 2048, 128>}]} {
    %0 = arith.index_cast %arg0 : i32 to index
    %1 = memref.load %arg2[%0] : memref<2xi32, #tpu.memory_space<smem>>
    %c0_i32 = arith.constant 0 : i32
    %2 = arith.cmpi ne, %1, %c0_i32 : i32
    %3 = arith.extui %2 : i1 to i32
    %c0_i32_0 = arith.constant 0 : i32
    %4 = arith.cmpi ne, %3, %c0_i32_0 : i32
    scf.if %4 {
      %c0 = arith.constant 0 : index
      %c0_2 = arith.constant 0 : index
      %c0_3 = arith.constant 0 : index
      %8 = vector.load %arg3[%c0, %c0_2, %c0_3] : memref<1x2048x128xf32, #tpu.memory_space<vmem>>, vector<1x2048x128xf32>
      %c0_4 = arith.constant 0 : index
      %c0_5 = arith.constant 0 : index
      %c0_6 = arith.constant 0 : index
      %9 = vector.load %arg4[%c0_4, %c0_5, %c0_6] : memref<1x2048x128xf32, #tpu.memory_space<vmem>>, vector<1x2048x128xf32>
      tpu.vector_store %arg4[%c0_4, %c0_5, %c0_6], %8 {strides = array<i32>} : memref<1x2048x128xf32, #tpu.memory_space<vmem>>, vector<1x2048x128xf32>,
    } else {
    }
    %true = arith.constant true
    %5 = arith.xori %2, %true : i1
    %6 = arith.extui %5 : i1 to i32
    %c0_i32_1 = arith.constant 0 : i32
    %7 = arith.cmpi ne, %6, %c0_i32_1 : i32
    scf.if %7 {
      %cst = arith.constant 0.000000e+00 : f32
      %8 = vector.broadcast %cst : f32 to vector<1x2048x128xf32>
      %c0 = arith.constant 0 : index
      %c0_2 = arith.constant 0 : index
      %c0_3 = arith.constant 0 : index
      %9 = vector.load %arg4[%c0, %c0_2, %c0_3] : memref<1x2048x128xf32, #tpu.memory_space<vmem>>, vector<1x2048x128xf32>
      tpu.vector_store %arg4[%c0, %c0_2, %c0_3], %8 {strides = array<i32>} : memref<1x2048x128xf32, #tpu.memory_space<vmem>>, vector<1x2048x128xf32>,
    } else {
    }
    return
  }
  func.func @transform_0(%arg0: i32, %arg1: i32, %arg2: memref<2xi32, #tpu.memory_space<smem>>) -> (i32, i32, i32) {
    %c0_i32 = arith.constant 0 : i32
    %c0_i32_0 = arith.constant 0 : i32
    return %arg0, %arg1, %c0_i32 : i32, i32, i32
  }
  func.func @transform_1(%arg0: i32, %arg1: i32, %arg2: memref<2xi32, #tpu.memory_space<smem>>) -> (i32, i32, i32) {
    %c0_i32 = arith.constant 0 : i32
    %c0_i32_0 = arith.constant 0 : i32
    return %arg0, %arg1, %c0_i32 : i32, i32, i32
  }
}

</mosaic_0001>

<bundles_post_ra>
// kernel: _zero_missing_pallas.1
= control target key start
LH: loop header
LB: loop body
LE: loop exit
PB: predicated region body
PF: predicated region fallthrough
CT: control target
= control target key end

     0   :  { %s2191_s0 = inlined_call_operand.vmem [shape: s32[2], index: 0, kind: input, shape index: {}]   ;;  %s2192_s1 = inlined_call_operand.vmem [shape: f32[2,2048,128], index: 1, kind: input, shape index: {}]   ;;  %s2193_s2 = inlined_call_operand.vmem [shape: f32[2,2048,128], index: 2, kind: output, shape index: {}]  }
   0x1   :  { %s7_s11 = sshll.u32 %s2191_s0, 4  ;;  %s8_s11 = int_to_ptr.vmem [resolvable:$true] %s7_s11 }
   0x2   :  { %s1068_s12 = scalar_lea.vmem %s8_s11, 16  ;;  %p1073_p1 = scmp.lt.s32.totalorder %s8_s11, %s8_s11 }
   0x3   :  { %p1069_p0 = scmp.ne.s32.totalorder %s8_s11, %s1068_s12  ;;  %p1074_p2 = scmp.lt.s32.totalorder %s1068_s12, %s1068_s12 }
   0x5   :  { %p1075_p3 = por %p1074_p2, %p1073_p1 }
   0x7   :  { %p1076_p4 = pnand %p1075_p3, %p1069_p0 }
   0x9   :  { %1079 = shalt.err (!%p1076_p4)  }
   0xa   :  { %s1106_s13 = smov [#allocation3]  }
   0xb   :  { %10 = dma.vmem_to_smem %s8_s11, 16, %s1106_s13, [#allocation2] }
   0xc   :  { %1092 = dma.done.wait [#allocation2], 16 }
   0xd   :  { %1093 = vsyncadd [#allocation2], 4294967280 }
   0xe   :  { %12 = sfence }
   0xf   :  { %s1126_s14 = smov 0   ;;  %s1128_s15 = smov 0  }
  0x10   :  { %s1130_s16 = smov 0  }
  0x11 LB: > { %s30_s0 = sadd.s32 1, %s1100_s15  ;;  %p1031_p5 = scmp.ge.s32.totalorder %s1104_s16, 1  ;;  %s1104_s16 = sphi %s1130_s16, %s18_s16   ;;  %s1100_s15 = sphi %s1128_s15, %s2195_s15   ;;  %s1096_s14 = sphi %s1126_s14, %s2194_s14  }
  0x12   : > { %p32_p6 = scmp.ge.s32.totalorder %s30_s0, 2  ;;  %p115_p7 = scmp.lt.s32.totalorder %s1104_s16, 3 }
  0x14   : > { %s2197_s0 = smov (%p32_p6, %s30_s0), 0  ;;  %p116_p8 = pnand %p1031_p5, %p115_p7 }
  0x15   : > { %p144_p9 = scmp.lt.s32.totalorder (!%p116_p8), %s1096_s14, 1  ;;  %s1144_s17 = sld [smem:[#allocation3 + %s1096_s14]] (!%p116_p8) }
  0x16   : > { %119 = sbr.rel (%p116_p8) target bundleno = 300 (0x12c), region = 24 }
  0x1b   : > { %s2199_s14 = smov (!%p144_p9, %s1096_s14), 1  ;;  %p1036_p10 = scmp.eq.s32.totalorder %s1144_s17, 0 }
  0x1c   : > { %s1040_s18 = sshll.u32 %s2199_s14, 11 }
  0x1d   : > { %s1149_s21 = scalar_lea.vmem %s2192_s1, %s1040_s18  ;;  %s1154_s24 = scalar_lea.vmem %s2193_s2, %s1040_s18 }
  0x1e   : > { %167 = sbr.rel (%p1036_p10) target bundleno = 164 (0xa4), region = 28 }
  0x23   : > { %v168_v0 = vld [vmem:[%s1149_s21] sm:$0xff]  ;;  %v169_v1 = vld [vmem:[%s1149_s21 + $0x8] sm:$0xff]  ;;  %v170_v2 = vld [vmem:[%s1149_s21 + $0x10] sm:$0xff] }
  0x24   : > { %424 = vst [vmem:[%s1154_s24] sm:$0xff] %v168_v0  ;;  %425 = vst [vmem:[%s1154_s24 + $0x8] sm:$0xff] %v169_v1  ;;  %v171_v3 = vld [vmem:[%s1149_s21 + $0x18] sm:$0xff]  ;;  %v172_v4 = vld [vmem:[%s1149_s21 + $0x20] sm:$0xff] }
  0x25   : > { %426 = vst [vmem:[%s1154_s24 + $0x10] sm:$0xff] %v170_v2  ;;  %v173_v5 = vld [vmem:[%s1149_s21 + $0x28] sm:$0xff]  ;;  %427 = vst [vmem:[%s1154_s24 + $0x18] sm:$0xff] %v171_v3  ;;  %v174_v6 = vld [vmem:[%s1149_s21 + $0x30] sm:$0xff] }
  0x26   : > { %428 = vst [vmem:[%s1154_s24 + $0x20] sm:$0xff] %v172_v4  ;;  %429 = vst [vmem:[%s1154_s24 + $0x28] sm:$0xff] %v173_v5  ;;  %v175_v7 = vld [vmem:[%s1149_s21 + $0x38] sm:$0xff]  ;;  %v176_v8 = vld [vmem:[%s1149_s21 + $0x40] sm:$0xff] }
  0x27   : > { %430 = vst [vmem:[%s1154_s24 + $0x30] sm:$0xff] %v174_v6  ;;  %431 = vst [vmem:[%s1154_s24 + $0x38] sm:$0xff] %v175_v7  ;;  %v177_v9 = vld [vmem:[%s1149_s21 + $0x48] sm:$0xff]  ;;  %v178_v10 = vld [vmem:[%s1149_s21 + $0x50] sm:$0xff] }
  0x28   : > { %432 = vst [vmem:[%s1154_s24 + $0x40] sm:$0xff] %v176_v8  ;;  %v179_v11 = vld [vmem:[%s1149_s21 + $0x58] sm:$0xff]  ;;  %433 = vst [vmem:[%s1154_s24 + $0x48] sm:$0xff] %v177_v9  ;;  %v180_v12 = vld [vmem:[%s1149_s21 + $0x60] sm:$0xff] }
  0x29   : > { %434 = vst [vmem:[%s1154_s24 + $0x50] sm:$0xff] %v178_v10  ;;  %435 = vst [vmem:[%s1154_s24 + $0x58] sm:$0xff] %v179_v11  ;;  %v181_v13 = vld [vmem:[%s1149_s21 + $0x68] sm:$0xff]  ;;  %v182_v14 = vld [vmem:[%s1149_s21 + $0x70] sm:$0xff] }
  0x2a   : > { %436 = vst [vmem:[%s1154_s24 + $0x60] sm:$0xff] %v180_v12  ;;  %437 = vst [vmem:[%s1154_s24 + $0x68] sm:$0xff] %v181_v13  ;;  %v183_v15 = vld [vmem:[%s1149_s21 + $0x78] sm:$0xff]  ;;  %v184_v16 = vld [vmem:[%s1149_s21 + $0x80] sm:$0xff] }
  0x2b   : > { %438 = vst [vmem:[%s1154_s24 + $0x70] sm:$0xff] %v182_v14  ;;  %v185_v17 = vld [vmem:[%s1149_s21 + $0x88] sm:$0xff]  ;;  %439 = vst [vmem:[%s1154_s24 + $0x78] sm:$0xff] %v183_v15  ;;  %v186_v18 = vld [vmem:[%s1149_s21 + $0x90] sm:$0xff] }
  0x2c   : > { %440 = vst [vmem:[%s1154_s24 + $0x80] sm:$0xff] %v184_v16  ;;  %441 = vst [vmem:[%s1154_s24 + $0x88] sm:$0xff] %v185_v17  ;;  %v187_v19 = vld [vmem:[%s1149_s21 + $0x98] sm:$0xff]  ;;  %v188_v20 = vld [vmem:[%s1149_s21 + $0xa0] sm:$0xff] }
  0x2d   : > { %442 = vst [vmem:[%s1154_s24 + $0x90] sm:$0xff] %v186_v18  ;;  %443 = vst [vmem:[%s1154_s24 + $0x98] sm:$0xff] %v187_v19  ;;  %v189_v21 = vld [vmem:[%s1149_s21 + $0xa8] sm:$0xff]  ;;  %v190_v22 = vld [vmem:[%s1149_s21 + $0xb0] sm:$0xff] }
  0x2e   : > { %444 = vst [vmem:[%s1154_s24 + $0xa0] sm:$0xff] %v188_v20  ;;  %v191_v23 = vld [vmem:[%s1149_s21 + $0xb8] sm:$0xff]  ;;  %445 = vst [vmem:[%s1154_s24 + $0xa8] sm:$0xff] %v189_v21  ;;  %v192_v24 = vld [vmem:[%s1149_s21 + $0xc0] sm:$0xff] }
  0x2f   : > { %446 = vst [vmem:[%s1154_s24 + $0xb0] sm:$0xff] %v190_v22  ;;  %447 = vst [vmem:[%s1154_s24 + $0xb8] sm:$0xff] %v191_v23  ;;  %v193_v25 = vld [vmem:[%s1149_s21 + $0xc8] sm:$0xff]  ;;  %v194_v26 = vld [vmem:[%s1149_s21 + $0xd0] sm:$0xff] }
  0x30   : > { %448 = vst [vmem:[%s1154_s24 + $0xc0] sm:$0xff] %v192_v24  ;;  %449 = vst [vmem:[%s1154_s24 + $0xc8] sm:$0xff] %v193_v25  ;;  %v195_v27 = vld [vmem:[%s1149_s21 + $0xd8] sm:$0xff]  ;;  %v196_v28 = vld [vmem:[%s1149_s21 + $0xe0] sm:$0xff] }
  0x31   : > { %450 = vst [vmem:[%s1154_s24 + $0xd0] sm:$0xff] %v194_v26  ;;  %v197_v29 = vld [vmem:[%s1149_s21 + $0xe8] sm:$0xff]  ;;  %451 = vst [vmem:[%s1154_s24 + $0xd8] sm:$0xff] %v195_v27  ;;  %v198_v30 = vld [vmem:[%s1149_s21 + $0xf0] sm:$0xff] }
  0x32   : > { %452 = vst [vmem:[%s1154_s24 + $0xe0] sm:$0xff] %v196_v28  ;;  %453 = vst [vmem:[%s1154_s24 + $0xe8] sm:$0xff] %v197_v29  ;;  %v199_v31 = vld [vmem:[%s1149_s21 + $0xf8] sm:$0xff]  ;;  %v200_v32 = vld [vmem:[%s1149_s21 + $0x100] sm:$0xff] }
  0x33   : > { %454 = vst [vmem:[%s1154_s24 + $0xf0] sm:$0xff] %v198_v30  ;;  %455 = vst [vmem:[%s1154_s24 + $0xf8] sm:$0xff] %v199_v31  ;;  %v201_v33 = vld [vmem:[%s1149_s21 + $0x108] sm:$0xff]  ;;  %v202_v34 = vld [vmem:[%s1149_s21 + $0x110] sm:$0xff] }
  0x34   : > { %456 = vst [vmem:[%s1154_s24 + $0x100] sm:$0xff] %v200_v32  ;;  %v203_v35 = vld [vmem:[%s1149_s21 + $0x118] sm:$0xff]  ;;  %457 = vst [vmem:[%s1154_s24 + $0x108] sm:$0xff] %v201_v33  ;;  %v204_v36 = vld [vmem:[%s1149_s21 + $0x120] sm:$0xff] }
  0x35   : > { %458 = vst [vmem:[%s1154_s24 + $0x110] sm:$0xff] %v202_v34  ;;  %459 = vst [vmem:[%s1154_s24 + $0x118] sm:$0xff] %v203_v35  ;;  %v205_v37 = vld [vmem:[%s1149_s21 + $0x128] sm:$0xff]  ;;  %v206_v38 = vld [vmem:[%s1149_s21 + $0x130] sm:$0xff] }
  0x36   : > { %460 = vst [vmem:[%s1154_s24 + $0x120] sm:$0xff] %v204_v36  ;;  %461 = vst [vmem:[%s1154_s24 + $0x128] sm:$0xff] %v205_v37  ;;  %v207_v39 = vld [vmem:[%s1149_s21 + $0x138] sm:$0xff]  ;;  %v208_v40 = vld [vmem:[%s1149_s21 + $0x140] sm:$0xff] }
  0x37   : > { %462 = vst [vmem:[%s1154_s24 + $0x130] sm:$0xff] %v206_v38  ;;  %v209_v41 = vld [vmem:[%s1149_s21 + $0x148] sm:$0xff]  ;;  %463 = vst [vmem:[%s1154_s24 + $0x138] sm:$0xff] %v207_v39  ;;  %v210_v42 = vld [vmem:[%s1149_s21 + $0x150] sm:$0xff] }
  0x38   : > { %464 = vst [vmem:[%s1154_s24 + $0x140] sm:$0xff] %v208_v40  ;;  %465 = vst [vmem:[%s1154_s24 + $0x148] sm:$0xff] %v209_v41  ;;  %v211_v43 = vld [vmem:[%s1149_s21 + $0x158] sm:$0xff]  ;;  %v212_v44 = vld [vmem:[%s1149_s21 + $0x160] sm:$0xff] }
  0x39   : > { %466 = vst [vmem:[%s1154_s24 + $0x150] sm:$0xff] %v210_v42  ;;  %467 = vst [vmem:[%s1154_s24 + $0x158] sm:$0xff] %v211_v43  ;;  %v213_v45 = vld [vmem:[%s1149_s21 + $0x168] sm:$0xff]  ;;  %v214_v46 = vld [vmem:[%s1149_s21 + $0x170] sm:$0xff] }
  0x3a   : > { %468 = vst [vmem:[%s1154_s24 + $0x160] sm:$0xff] %v212_v44  ;;  %v215_v47 = vld [vmem:[%s1149_s21 + $0x178] sm:$0xff]  ;;  %469 = vst [vmem:[%s1154_s24 + $0x168] sm:$0xff] %v213_v45  ;;  %v216_v48 = vld [vmem:[%s1149_s21 + $0x180] sm:$0xff] }
  0x3b   : > { %470 = vst [vmem:[%s1154_s24 + $0x170] sm:$0xff] %v214_v46  ;;  %471 = vst [vmem:[%s1154_s24 + $0x178] sm:$0xff] %v215_v47  ;;  %v217_v49 = vld [vmem:[%s1149_s21 + $0x188] sm:$0xff]  ;;  %v218_v50 = vld [vmem:[%s1149_s21 + $0x190] sm:$0xff] }
  0x3c   : > { %472 = vst [vmem:[%s1154_s24 + $0x180] sm:$0xff] %v216_v48  ;;  %473 = vst [vmem:[%s1154_s24 + $0x188] sm:$0xff] %v217_v49  ;;  %v219_v51 = vld [vmem:[%s1149_s21 + $0x198] sm:$0xff]  ;;  %v220_v52 = vld [vmem:[%s1149_s21 + $0x1a0] sm:$0xff] }
  0x3d   : > { %474 = vst [vmem:[%s1154_s24 + $0x190] sm:$0xff] %v218_v50  ;;  %v221_v53 = vld [vmem:[%s1149_s21 + $0x1a8] sm:$0xff]  ;;  %475 = vst [vmem:[%s1154_s24 + $0x198] sm:$0xff] %v219_v51  ;;  %v222_v54 = vld [vmem:[%s1149_s21 + $0x1b0] sm:$0xff] }
  0x3e   : > { %476 = vst [vmem:[%s1154_s24 + $0x1a0] sm:$0xff] %v220_v52  ;;  %477 = vst [vmem:[%s1154_s24 + $0x1a8] sm:$0xff] %v221_v53  ;;  %v223_v55 = vld [vmem:[%s1149_s21 + $0x1b8] sm:$0xff]  ;;  %v224_v56 = vld [vmem:[%s1149_s21 + $0x1c0] sm:$0xff] }
  0x3f   : > { %478 = vst [vmem:[%s1154_s24 + $0x1b0] sm:$0xff] %v222_v54  ;;  %479 = vst [vmem:[%s1154_s24 + $0x1b8] sm:$0xff] %v223_v55  ;;  %v225_v57 = vld [vmem:[%s1149_s21 + $0x1c8] sm:$0xff]  ;;  %v226_v58 = vld [vmem:[%s1149_s21 + $0x1d0] sm:$0xff] }
  0x40   : > { %480 = vst [vmem:[%s1154_s24 + $0x1c0] sm:$0xff] %v224_v56  ;;  %v227_v59 = vld [vmem:[%s1149_s21 + $0x1d8] sm:$0xff]  ;;  %481 = vst [vmem:[%s1154_s24 + $0x1c8] sm:$0xff] %v225_v57  ;;  %v228_v60 = vld [vmem:[%s1149_s21 + $0x1e0] sm:$0xff] }
  0x41   : > { %482 = vst [vmem:[%s1154_s24 + $0x1d0] sm:$0xff] %v226_v58  ;;  %483 = vst [vmem:[%s1154_s24 + $0x1d8] sm:$0xff] %v227_v59  ;;  %v229_v61 = vld [vmem:[%s1149_s21 + $0x1e8] sm:$0xff]  ;;  %v230_v62 = vld [vmem:[%s1149_s21 + $0x1f0] sm:$0xff] }
  0x42   : > { %484 = vst [vmem:[%s1154_s24 + $0x1e0] sm:$0xff] %v228_v60  ;;  %485 = vst [vmem:[%s1154_s24 + $0x1e8] sm:$0xff] %v229_v61  ;;  %v231_v63 = vld [vmem:[%s1149_s21 + $0x1f8] sm:$0xff]  ;;  %v232_v0 = vld [vmem:[%s1149_s21 + $0x200] sm:$0xff] }
  0x43   : > { %486 = vst [vmem:[%s1154_s24 + $0x1f0] sm:$0xff] %v230_v62  ;;  %v233_v1 = vld [vmem:[%s1149_s21 + $0x208] sm:$0xff]  ;;  %487 = vst [vmem:[%s1154_s24 + $0x1f8] sm:$0xff] %v231_v63  ;;  %v234_v2 = vld [vmem:[%s1149_s21 + $0x210] sm:$0xff] }
  0x44   : > { %488 = vst [vmem:[%s1154_s24 + $0x200] sm:$0xff] %v232_v0  ;;  %489 = vst [vmem:[%s1154_s24 + $0x208] sm:$0xff] %v233_v1  ;;  %v235_v3 = vld [vmem:[%s1149_s21 + $0x218] sm:$0xff]  ;;  %v236_v4 = vld [vmem:[%s1149_s21 + $0x220] sm:$0xff] }
  0x45   : > { %490 = vst [vmem:[%s1154_s24 + $0x210] sm:$0xff] %v234_v2  ;;  %491 = vst [vmem:[%s1154_s24 + $0x218] sm:$0xff] %v235_v3  ;;  %v237_v5 = vld [vmem:[%s1149_s21 + $0x228] sm:$0xff]  ;;  %v238_v6 = vld [vmem:[%s1149_s21 + $0x230] sm:$0xff] }
  0x46   : > { %492 = vst [vmem:[%s1154_s24 + $0x220] sm:$0xff] %v236_v4  ;;  %v239_v7 = vld [vmem:[%s1149_s21 + $0x238] sm:$0xff]  ;;  %493 = vst [vmem:[%s1154_s24 + $0x228] sm:$0xff] %v237_v5  ;;  %v240_v8 = vld [vmem:[%s1149_s21 + $0x240] sm:$0xff] }
  0x47   : > { %494 = vst [vmem:[%s1154_s24 + $0x230] sm:$0xff] %v238_v6  ;;  %495 = vst [vmem:[%s1154_s24 + $0x238] sm:$0xff] %v239_v7  ;;  %v241_v9 = vld [vmem:[%s1149_s21 + $0x248] sm:$0xff]  ;;  %v242_v10 = vld [vmem:[%s1149_s21 + $0x250] sm:$0xff] }
  0x48   : > { %496 = vst [vmem:[%s1154_s24 + $0x240] sm:$0xff] %v240_v8  ;;  %497 = vst [vmem:[%s1154_s24 + $0x248] sm:$0xff] %v241_v9  ;;  %v243_v11 = vld [vmem:[%s1149_s21 + $0x258] sm:$0xff]  ;;  %v244_v12 = vld [vmem:[%s1149_s21 + $0x260] sm:$0xff] }
  0x49   : > { %498 = vst [vmem:[%s1154_s24 + $0x250] sm:$0xff] %v242_v10  ;;  %v245_v13 = vld [vmem:[%s1149_s21 + $0x268] sm:$0xff]  ;;  %499 = vst [vmem:[%s1154_s24 + $0x258] sm:$0xff] %v243_v11  ;;  %v246_v14 = vld [vmem:[%s1149_s21 + $0x270] sm:$0xff] }
  0x4a   : > { %500 = vst [vmem:[%s1154_s24 + $0x260] sm:$0xff] %v244_v12  ;;  %501 = vst [vmem:[%s1154_s24 + $0x268] sm:$0xff] %v245_v13  ;;  %v247_v15 = vld [vmem:[%s1149_s21 + $0x278] sm:$0xff]  ;;  %v248_v16 = vld [vmem:[%s1149_s21 + $0x280] sm:$0xff] }
  0x4b   : > { %502 = vst [vmem:[%s1154_s24 + $0x270] sm:$0xff] %v246_v14  ;;  %503 = vst [vmem:[%s1154_s24 + $0x278] sm:$0xff] %v247_v15  ;;  %v249_v17 = vld [vmem:[%s1149_s21 + $0x288] sm:$0xff]  ;;  %v250_v18 = vld [vmem:[%s1149_s21 + $0x290] sm:$0xff] }
  0x4c   : > { %504 = vst [vmem:[%s1154_s24 + $0x280] sm:$0xff] %v248_v16  ;;  %v251_v19 = vld [vmem:[%s1149_s21 + $0x298] sm:$0xff]  ;;  %505 = vst [vmem:[%s1154_s24 + $0x288] sm:$0xff] %v249_v17  ;;  %v252_v20 = vld [vmem:[%s1149_s21 + $0x2a0] sm:$0xff] }
  0x4d   : > { %506 = vst [vmem:[%s1154_s24 + $0x290] sm:$0xff] %v250_v18  ;;  %507 = vst [vmem:[%s1154_s24 + $0x298] sm:$0xff] %v251_v19  ;;  %v253_v21 = vld [vmem:[%s1149_s21 + $0x2a8] sm:$0xff]  ;;  %v254_v22 = vld [vmem:[%s1149_s21 + $0x2b0] sm:$0xff] }
  0x4e   : > { %508 = vst [vmem:[%s1154_s24 + $0x2a0] sm:$0xff] %v252_v20  ;;  %509 = vst [vmem:[%s1154_s24 + $0x2a8] sm:$0xff] %v253_v21  ;;  %v255_v23 = vld [vmem:[%s1149_s21 + $0x2b8] sm:$0xff]  ;;  %v256_v24 = vld [vmem:[%s1149_s21 + $0x2c0] sm:$0xff] }
  0x4f   : > { %510 = vst [vmem:[%s1154_s24 + $0x2b0] sm:$0xff] %v254_v22  ;;  %v257_v25 = vld [vmem:[%s1149_s21 + $0x2c8] sm:$0xff]  ;;  %511 = vst [vmem:[%s1154_s24 + $0x2b8] sm:$0xff] %v255_v23  ;;  %v258_v26 = vld [vmem:[%s1149_s21 + $0x2d0] sm:$0xff] }
  0x50   : > { %512 = vst [vmem:[%s1154_s24 + $0x2c0] sm:$0xff] %v256_v24  ;;  %513 = vst [vmem:[%s1154_s24 + $0x2c8] sm:$0xff] %v257_v25  ;;  %v259_v27 = vld [vmem:[%s1149_s21 + $0x2d8] sm:$0xff]  ;;  %v260_v28 = vld [vmem:[%s1149_s21 + $0x2e0] sm:$0xff] }
  0x51   : > { %514 = vst [vmem:[%s1154_s24 + $0x2d0] sm:$0xff] %v258_v26  ;;  %515 = vst [vmem:[%s1154_s24 + $0x2d8] sm:$0xff] %v259_v27  ;;  %v261_v29 = vld [vmem:[%s1149_s21 + $0x2e8] sm:$0xff]  ;;  %v262_v30 = vld [vmem:[%s1149_s21 + $0x2f0] sm:$0xff] }
  0x52   : > { %516 = vst [vmem:[%s1154_s24 + $0x2e0] sm:$0xff] %v260_v28  ;;  %v263_v31 = vld [vmem:[%s1149_s21 + $0x2f8] sm:$0xff]  ;;  %517 = vst [vmem:[%s1154_s24 + $0x2e8] sm:$0xff] %v261_v29  ;;  %v264_v32 = vld [vmem:[%s1149_s21 + $0x300] sm:$0xff] }
  0x53   : > { %518 = vst [vmem:[%s1154_s24 + $0x2f0] sm:$0xff] %v262_v30  ;;  %519 = vst [vmem:[%s1154_s24 + $0x2f8] sm:$0xff] %v263_v31  ;;  %v265_v33 = vld [vmem:[%s1149_s21 + $0x308] sm:$0xff]  ;;  %v266_v34 = vld [vmem:[%s1149_s21 + $0x310] sm:$0xff] }
  0x54   : > { %520 = vst [vmem:[%s1154_s24 + $0x300] sm:$0xff] %v264_v32  ;;  %521 = vst [vmem:[%s1154_s24 + $0x308] sm:$0xff] %v265_v33  ;;  %v267_v35 = vld [vmem:[%s1149_s21 + $0x318] sm:$0xff]  ;;  %v268_v36 = vld [vmem:[%s1149_s21 + $0x320] sm:$0xff] }
  0x55   : > { %522 = vst [vmem:[%s1154_s24 + $0x310] sm:$0xff] %v266_v34  ;;  %v269_v37 = vld [vmem:[%s1149_s21 + $0x328] sm:$0xff]  ;;  %523 = vst [vmem:[%s1154_s24 + $0x318] sm:$0xff] %v267_v35  ;;  %v270_v38 = vld [vmem:[%s1149_s21 + $0x330] sm:$0xff] }
  0x56   : > { %524 = vst [vmem:[%s1154_s24 + $0x320] sm:$0xff] %v268_v36  ;;  %525 = vst [vmem:[%s1154_s24 + $0x328] sm:$0xff] %v269_v37  ;;  %v271_v39 = vld [vmem:[%s1149_s21 + $0x338] sm:$0xff]  ;;  %v272_v40 = vld [vmem:[%s1149_s21 + $0x340] sm:$0xff] }
  0x57   : > { %526 = vst [vmem:[%s1154_s24 + $0x330] sm:$0xff] %v270_v38  ;;  %527 = vst [vmem:[%s1154_s24 + $0x338] sm:$0xff] %v271_v39  ;;  %v273_v41 = vld [vmem:[%s1149_s21 + $0x348] sm:$0xff]  ;;  %v274_v42 = vld [vmem:[%s1149_s21 + $0x350] sm:$0xff] }
  0x58   : > { %528 = vst [vmem:[%s1154_s24 + $0x340] sm:$0xff] %v272_v40  ;;  %v275_v43 = vld [vmem:[%s1149_s21 + $0x358] sm:$0xff]  ;;  %529 = vst [vmem:[%s1154_s24 + $0x348] sm:$0xff] %v273_v41  ;;  %v276_v44 = vld [vmem:[%s1149_s21 + $0x360] sm:$0xff] }
  0x59   : > { %530 = vst [vmem:[%s1154_s24 + $0x350] sm:$0xff] %v274_v42  ;;  %531 = vst [vmem:[%s1154_s24 + $0x358] sm:$0xff] %v275_v43  ;;  %v277_v45 = vld [vmem:[%s1149_s21 + $0x368] sm:$0xff]  ;;  %v278_v46 = vld [vmem:[%s1149_s21 + $0x370] sm:$0xff] }
  0x5a   : > { %532 = vst [vmem:[%s1154_s24 + $0x360] sm:$0xff] %v276_v44  ;;  %533 = vst [vmem:[%s1154_s24 + $0x368] sm:$0xff] %v277_v45  ;;  %v279_v47 = vld [vmem:[%s1149_s21 + $0x378] sm:$0xff]  ;;  %v280_v48 = vld [vmem:[%s1149_s21 + $0x380] sm:$0xff] }
  0x5b   : > { %534 = vst [vmem:[%s1154_s24 + $0x370] sm:$0xff] %v278_v46  ;;  %v281_v49 = vld [vmem:[%s1149_s21 + $0x388] sm:$0xff]  ;;  %535 = vst [vmem:[%s1154_s24 + $0x378] sm:$0xff] %v279_v47  ;;  %v282_v50 = vld [vmem:[%s1149_s21 + $0x390] sm:$0xff] }
  0x5c   : > { %536 = vst [vmem:[%s1154_s24 + $0x380] sm:$0xff] %v280_v48  ;;  %537 = vst [vmem:[%s1154_s24 + $0x388] sm:$0xff] %v281_v49  ;;  %v283_v51 = vld [vmem:[%s1149_s21 + $0x398] sm:$0xff]  ;;  %v284_v52 = vld [vmem:[%s1149_s21 + $0x3a0] sm:$0xff] }
  0x5d   : > { %538 = vst [vmem:[%s1154_s24 + $0x390] sm:$0xff] %v282_v50  ;;  %539 = vst [vmem:[%s1154_s24 + $0x398] sm:$0xff] %v283_v51  ;;  %v285_v53 = vld [vmem:[%s1149_s21 + $0x3a8] sm:$0xff]  ;;  %v286_v54 = vld [vmem:[%s1149_s21 + $0x3b0] sm:$0xff] }
  0x5e   : > { %540 = vst [vmem:[%s1154_s24 + $0x3a0] sm:$0xff] %v284_v52  ;;  %v287_v55 = vld [vmem:[%s1149_s21 + $0x3b8] sm:$0xff]  ;;  %541 = vst [vmem:[%s1154_s24 + $0x3a8] sm:$0xff] %v285_v53  ;;  %v288_v56 = vld [vmem:[%s1149_s21 + $0x3c0] sm:$0xff] }
  0x5f   : > { %542 = vst [vmem:[%s1154_s24 + $0x3b0] sm:$0xff] %v286_v54  ;;  %543 = vst [vmem:[%s1154_s24 + $0x3b8] sm:$0xff] %v287_v55  ;;  %v289_v57 = vld [vmem:[%s1149_s21 + $0x3c8] sm:$0xff]  ;;  %v290_v58 = vld [vmem:[%s1149_s21 + $0x3d0] sm:$0xff] }
  0x60   : > { %544 = vst [vmem:[%s1154_s24 + $0x3c0] sm:$0xff] %v288_v56  ;;  %545 = vst [vmem:[%s1154_s24 + $0x3c8] sm:$0xff] %v289_v57  ;;  %v291_v59 = vld [vmem:[%s1149_s21 + $0x3d8] sm:$0xff]  ;;  %v292_v60 = vld [vmem:[%s1149_s21 + $0x3e0] sm:$0xff] }
  0x61   : > { %546 = vst [vmem:[%s1154_s24 + $0x3d0] sm:$0xff] %v290_v58  ;;  %v293_v61 = vld [vmem:[%s1149_s21 + $0x3e8] sm:$0xff]  ;;  %547 = vst [vmem:[%s1154_s24 + $0x3d8] sm:$0xff] %v291_v59  ;;  %v294_v62 = vld [vmem:[%s1149_s21 + $0x3f0] sm:$0xff] }
  0x62   : > { %548 = vst [vmem:[%s1154_s24 + $0x3e0] sm:$0xff] %v292_v60  ;;  %549 = vst [vmem:[%s1154_s24 + $0x3e8] sm:$0xff] %v293_v61  ;;  %v295_v63 = vld [vmem:[%s1149_s21 + $0x3f8] sm:$0xff]  ;;  %v296_v0 = vld [vmem:[%s1149_s21 + $0x400] sm:$0xff] }
  0x63   : > { %550 = vst [vmem:[%s1154_s24 + $0x3f0] sm:$0xff] %v294_v62  ;;  %551 = vst [vmem:[%s1154_s24 + $0x3f8] sm:$0xff] %v295_v63  ;;  %v297_v1 = vld [vmem:[%s1149_s21 + $0x408] sm:$0xff]  ;;  %v298_v2 = vld [vmem:[%s1149_s21 + $0x410] sm:$0xff] }
  0x64   : > { %552 = vst [vmem:[%s1154_s24 + $0x400] sm:$0xff] %v296_v0  ;;  %v299_v3 = vld [vmem:[%s1149_s21 + $0x418] sm:$0xff]  ;;  %553 = vst [vmem:[%s1154_s24 + $0x408] sm:$0xff] %v297_v1  ;;  %v300_v4 = vld [vmem:[%s1149_s21 + $0x420] sm:$0xff] }
  0x65   : > { %554 = vst [vmem:[%s1154_s24 + $0x410] sm:$0xff] %v298_v2  ;;  %555 = vst [vmem:[%s1154_s24 + $0x418] sm:$0xff] %v299_v3  ;;  %v301_v5 = vld [vmem:[%s1149_s21 + $0x428] sm:$0xff]  ;;  %v302_v6 = vld [vmem:[%s1149_s21 + $0x430] sm:$0xff] }
  0x66   : > { %556 = vst [vmem:[%s1154_s24 + $0x420] sm:$0xff] %v300_v4  ;;  %557 = vst [vmem:[%s1154_s24 + $0x428] sm:$0xff] %v301_v5  ;;  %v303_v7 = vld [vmem:[%s1149_s21 + $0x438] sm:$0xff]  ;;  %v304_v8 = vld [vmem:[%s1149_s21 + $0x440] sm:$0xff] }
  0x67   : > { %558 = vst [vmem:[%s1154_s24 + $0x430] sm:$0xff] %v302_v6  ;;  %v305_v9 = vld [vmem:[%s1149_s21 + $0x448] sm:$0xff]  ;;  %559 = vst [vmem:[%s1154_s24 + $0x438] sm:$0xff] %v303_v7  ;;  %v306_v10 = vld [vmem:[%s1149_s21 + $0x450] sm:$0xff] }
  0x68   : > { %560 = vst [vmem:[%s1154_s24 + $0x440] sm:$0xff] %v304_v8  ;;  %561 = vst [vmem:[%s1154_s24 + $0x448] sm:$0xff] %v305_v9  ;;  %v307_v11 = vld [vmem:[%s1149_s21 + $0x458] sm:$0xff]  ;;  %v308_v12 = vld [vmem:[%s1149_s21 + $0x460] sm:$0xff] }
  0x69   : > { %562 = vst [vmem:[%s1154_s24 + $0x450] sm:$0xff] %v306_v10  ;;  %563 = vst [vmem:[%s1154_s24 + $0x458] sm:$0xff] %v307_v11  ;;  %v309_v13 = vld [vmem:[%s1149_s21 + $0x468] sm:$0xff]  ;;  %v310_v14 = vld [vmem:[%s1149_s21 + $0x470] sm:$0xff] }
  0x6a   : > { %564 = vst [vmem:[%s1154_s24 + $0x460] sm:$0xff] %v308_v12  ;;  %v311_v15 = vld [vmem:[%s1149_s21 + $0x478] sm:$0xff]  ;;  %565 = vst [vmem:[%s1154_s24 + $0x468] sm:$0xff] %v309_v13  ;;  %v312_v16 = vld [vmem:[%s1149_s21 + $0x480] sm:$0xff] }
  0x6b   : > { %566 = vst [vmem:[%s1154_s24 + $0x470] sm:$0xff] %v310_v14  ;;  %567 = vst [vmem:[%s1154_s24 + $0x478] sm:$0xff] %v311_v15  ;;  %v313_v17 = vld [vmem:[%s1149_s21 + $0x488] sm:$0xff]  ;;  %v314_v18 = vld [vmem:[%s1149_s21 + $0x490] sm:$0xff] }
  0x6c   : > { %568 = vst [vmem:[%s1154_s24 + $0x480] sm:$0xff] %v312_v16  ;;  %569 = vst [vmem:[%s1154_s24 + $0x488] sm:$0xff] %v313_v17  ;;  %v315_v19 = vld [vmem:[%s1149_s21 + $0x498] sm:$0xff]  ;;  %v316_v20 = vld [vmem:[%s1149_s21 + $0x4a0] sm:$0xff] }
  0x6d   : > { %570 = vst [vmem:[%s1154_s24 + $0x490] sm:$0xff] %v314_v18  ;;  %v317_v21 = vld [vmem:[%s1149_s21 + $0x4a8] sm:$0xff]  ;;  %571 = vst [vmem:[%s1154_s24 + $0x498] sm:$0xff] %v315_v19  ;;  %v318_v22 = vld [vmem:[%s1149_s21 + $0x4b0] sm:$0xff] }
  0x6e   : > { %572 = vst [vmem:[%s1154_s24 + $0x4a0] sm:$0xff] %v316_v20  ;;  %573 = vst [vmem:[%s1154_s24 + $0x4a8] sm:$0xff] %v317_v21  ;;  %v319_v23 = vld [vmem:[%s1149_s21 + $0x4b8] sm:$0xff]  ;;  %v320_v24 = vld [vmem:[%s1149_s21 + $0x4c0] sm:$0xff] }
  0x6f   : > { %574 = vst [vmem:[%s1154_s24 + $0x4b0] sm:$0xff] %v318_v22  ;;  %575 = vst [vmem:[%s1154_s24 + $0x4b8] sm:$0xff] %v319_v23  ;;  %v321_v25 = vld [vmem:[%s1149_s21 + $0x4c8] sm:$0xff]  ;;  %v322_v26 = vld [vmem:[%s1149_s21 + $0x4d0] sm:$0xff] }
  0x70   : > { %576 = vst [vmem:[%s1154_s24 + $0x4c0] sm:$0xff] %v320_v24  ;;  %v323_v27 = vld [vmem:[%s1149_s21 + $0x4d8] sm:$0xff]  ;;  %577 = vst [vmem:[%s1154_s24 + $0x4c8] sm:$0xff] %v321_v25  ;;  %v324_v28 = vld [vmem:[%s1149_s21 + $0x4e0] sm:$0xff] }
  0x71   : > { %578 = vst [vmem:[%s1154_s24 + $0x4d0] sm:$0xff] %v322_v26  ;;  %579 = vst [vmem:[%s1154_s24 + $0x4d8] sm:$0xff] %v323_v27  ;;  %v325_v29 = vld [vmem:[%s1149_s21 + $0x4e8] sm:$0xff]  ;;  %v326_v30 = vld [vmem:[%s1149_s21 + $0x4f0] sm:$0xff] }
  0x72   : > { %580 = vst [vmem:[%s1154_s24 + $0x4e0] sm:$0xff] %v324_v28  ;;  %581 = vst [vmem:[%s1154_s24 + $0x4e8] sm:$0xff] %v325_v29  ;;  %v327_v31 = vld [vmem:[%s1149_s21 + $0x4f8] sm:$0xff]  ;;  %v328_v32 = vld [vmem:[%s1149_s21 + $0x500] sm:$0xff] }
  0x73   : > { %582 = vst [vmem:[%s1154_s24 + $0x4f0] sm:$0xff] %v326_v30  ;;  %v329_v33 = vld [vmem:[%s1149_s21 + $0x508] sm:$0xff]  ;;  %583 = vst [vmem:[%s1154_s24 + $0x4f8] sm:$0xff] %v327_v31  ;;  %v330_v34 = vld [vmem:[%s1149_s21 + $0x510] sm:$0xff] }
  0x74   : > { %584 = vst [vmem:[%s1154_s24 + $0x500] sm:$0xff] %v328_v32  ;;  %585 = vst [vmem:[%s1154_s24 + $0x508] sm:$0xff] %v329_v33  ;;  %v331_v35 = vld [vmem:[%s1149_s21 + $0x518] sm:$0xff]  ;;  %v332_v36 = vld [vmem:[%s1149_s21 + $0x520] sm:$0xff] }
  0x75   : > { %586 = vst [vmem:[%s1154_s24 + $0x510] sm:$0xff] %v330_v34  ;;  %587 = vst [vmem:[%s1154_s24 + $0x518] sm:$0xff] %v331_v35  ;;  %v333_v37 = vld [vmem:[%s1149_s21 + $0x528] sm:$0xff]  ;;  %v334_v38 = vld [vmem:[%s1149_s21 + $0x530] sm:$0xff] }
  0x76   : > { %588 = vst [vmem:[%s1154_s24 + $0x520] sm:$0xff] %v332_v36  ;;  %v335_v39 = vld [vmem:[%s1149_s21 + $0x538] sm:$0xff]  ;;  %589 = vst [vmem:[%s1154_s24 + $0x528] sm:$0xff] %v333_v37  ;;  %v336_v40 = vld [vmem:[%s1149_s21 + $0x540] sm:$0xff] }
  0x77   : > { %590 = vst [vmem:[%s1154_s24 + $0x530] sm:$0xff] %v334_v38  ;;  %591 = vst [vmem:[%s1154_s24 + $0x538] sm:$0xff] %v335_v39  ;;  %v337_v41 = vld [vmem:[%s1149_s21 + $0x548] sm:$0xff]  ;;  %v338_v42 = vld [vmem:[%s1149_s21 + $0x550] sm:$0xff] }
  0x78   : > { %592 = vst [vmem:[%s1154_s24 + $0x540] sm:$0xff] %v336_v40  ;;  %593 = vst [vmem:[%s1154_s24 + $0x548] sm:$0xff] %v337_v41  ;;  %v339_v43 = vld [vmem:[%s1149_s21 + $0x558] sm:$0xff]  ;;  %v340_v44 = vld [vmem:[%s1149_s21 + $0x560] sm:$0xff] }
  0x79   : > { %594 = vst [vmem:[%s1154_s24 + $0x550] sm:$0xff] %v338_v42  ;;  %v341_v45 = vld [vmem:[%s1149_s21 + $0x568] sm:$0xff]  ;;  %595 = vst [vmem:[%s1154_s24 + $0x558] sm:$0xff] %v339_v43  ;;  %v342_v46 = vld [vmem:[%s1149_s21 + $0x570] sm:$0xff] }
  0x7a   : > { %596 = vst [vmem:[%s1154_s24 + $0x560] sm:$0xff] %v340_v44  ;;  %597 = vst [vmem:[%s1154_s24 + $0x568] sm:$0xff] %v341_v45  ;;  %v343_v47 = vld [vmem:[%s1149_s21 + $0x578] sm:$0xff]  ;;  %v344_v48 = vld [vmem:[%s1149_s21 + $0x580] sm:$0xff] }
  0x7b   : > { %598 = vst [vmem:[%s1154_s24 + $0x570] sm:$0xff] %v342_v46  ;;  %599 = vst [vmem:[%s1154_s24 + $0x578] sm:$0xff] %v343_v47  ;;  %v345_v49 = vld [vmem:[%s1149_s21 + $0x588] sm:$0xff]  ;;  %v346_v50 = vld [vmem:[%s1149_s21 + $0x590] sm:$0xff] }
  0x7c   : > { %600 = vst [vmem:[%s1154_s24 + $0x580] sm:$0xff] %v344_v48  ;;  %v347_v51 = vld [vmem:[%s1149_s21 + $0x598] sm:$0xff]  ;;  %601 = vst [vmem:[%s1154_s24 + $0x588] sm:$0xff] %v345_v49  ;;  %v348_v52 = vld [vmem:[%s1149_s21 + $0x5a0] sm:$0xff] }
  0x7d   : > { %602 = vst [vmem:[%s1154_s24 + $0x590] sm:$0xff] %v346_v50  ;;  %603 = vst [vmem:[%s1154_s24 + $0x598] sm:$0xff] %v347_v51  ;;  %v349_v53 = vld [vmem:[%s1149_s21 + $0x5a8] sm:$0xff]  ;;  %v350_v54 = vld [vmem:[%s1149_s21 + $0x5b0] sm:$0xff] }
  0x7e   : > { %604 = vst [vmem:[%s1154_s24 + $0x5a0] sm:$0xff] %v348_v52  ;;  %605 = vst [vmem:[%s1154_s24 + $0x5a8] sm:$0xff] %v349_v53  ;;  %v351_v55 = vld [vmem:[%s1149_s21 + $0x5b8] sm:$0xff]  ;;  %v352_v56 = vld [vmem:[%s1149_s21 + $0x5c0] sm:$0xff] }
  0x7f   : > { %606 = vst [vmem:[%s1154_s24 + $0x5b0] sm:$0xff] %v350_v54  ;;  %v353_v57 = vld [vmem:[%s1149_s21 + $0x5c8] sm:$0xff]  ;;  %607 = vst [vmem:[%s1154_s24 + $0x5b8] sm:$0xff] %v351_v55  ;;  %v354_v58 = vld [vmem:[%s1149_s21 + $0x5d0] sm:$0xff] }
  0x80   : > { %608 = vst [vmem:[%s1154_s24 + $0x5c0] sm:$0xff] %v352_v56  ;;  %609 = vst [vmem:[%s1154_s24 + $0x5c8] sm:$0xff] %v353_v57  ;;  %v355_v59 = vld [vmem:[%s1149_s21 + $0x5d8] sm:$0xff]  ;;  %v356_v60 = vld [vmem:[%s1149_s21 + $0x5e0] sm:$0xff] }
  0x81   : > { %610 = vst [vmem:[%s1154_s24 + $0x5d0] sm:$0xff] %v354_v58  ;;  %611 = vst [vmem:[%s1154_s24 + $0x5d8] sm:$0xff] %v355_v59  ;;  %v357_v61 = vld [vmem:[%s1149_s21 + $0x5e8] sm:$0xff]  ;;  %v358_v62 = vld [vmem:[%s1149_s21 + $0x5f0] sm:$0xff] }
  0x82   : > { %612 = vst [vmem:[%s1154_s24 + $0x5e0] sm:$0xff] %v356_v60  ;;  %v359_v63 = vld [vmem:[%s1149_s21 + $0x5f8] sm:$0xff]  ;;  %613 = vst [vmem:[%s1154_s24 + $0x5e8] sm:$0xff] %v357_v61  ;;  %v360_v0 = vld [vmem:[%s1149_s21 + $0x600] sm:$0xff] }
  0x83   : > { %614 = vst [vmem:[%s1154_s24 + $0x5f0] sm:$0xff] %v358_v62  ;;  %615 = vst [vmem:[%s1154_s24 + $0x5f8] sm:$0xff] %v359_v63  ;;  %v361_v1 = vld [vmem:[%s1149_s21 + $0x608] sm:$0xff]  ;;  %v362_v2 = vld [vmem:[%s1149_s21 + $0x610] sm:$0xff] }
  0x84   : > { %616 = vst [vmem:[%s1154_s24 + $0x600] sm:$0xff] %v360_v0  ;;  %617 = vst [vmem:[%s1154_s24 + $0x608] sm:$0xff] %v361_v1  ;;  %v363_v3 = vld [vmem:[%s1149_s21 + $0x618] sm:$0xff]  ;;  %v364_v4 = vld [vmem:[%s1149_s21 + $0x620] sm:$0xff] }
  0x85   : > { %618 = vst [vmem:[%s1154_s24 + $0x610] sm:$0xff] %v362_v2  ;;  %v365_v5 = vld [vmem:[%s1149_s21 + $0x628] sm:$0xff]  ;;  %619 = vst [vmem:[%s1154_s24 + $0x618] sm:$0xff] %v363_v3  ;;  %v366_v6 = vld [vmem:[%s1149_s21 + $0x630] sm:$0xff] }
  0x86   : > { %620 = vst [vmem:[%s1154_s24 + $0x620] sm:$0xff] %v364_v4  ;;  %621 = vst [vmem:[%s1154_s24 + $0x628] sm:$0xff] %v365_v5  ;;  %v367_v7 = vld [vmem:[%s1149_s21 + $0x638] sm:$0xff]  ;;  %v368_v8 = vld [vmem:[%s1149_s21 + $0x640] sm:$0xff] }
  0x87   : > { %622 = vst [vmem:[%s1154_s24 + $0x630] sm:$0xff] %v366_v6  ;;  %623 = vst [vmem:[%s1154_s24 + $0x638] sm:$0xff] %v367_v7  ;;  %v369_v9 = vld [vmem:[%s1149_s21 + $0x648] sm:$0xff]  ;;  %v370_v10 = vld [vmem:[%s1149_s21 + $0x650] sm:$0xff] }
  0x88   : > { %624 = vst [vmem:[%s1154_s24 + $0x640] sm:$0xff] %v368_v8  ;;  %v371_v11 = vld [vmem:[%s1149_s21 + $0x658] sm:$0xff]  ;;  %625 = vst [vmem:[%s1154_s24 + $0x648] sm:$0xff] %v369_v9  ;;  %v372_v12 = vld [vmem:[%s1149_s21 + $0x660] sm:$0xff] }
  0x89   : > { %626 = vst [vmem:[%s1154_s24 + $0x650] sm:$0xff] %v370_v10  ;;  %627 = vst [vmem:[%s1154_s24 + $0x658] sm:$0xff] %v371_v11  ;;  %v373_v13 = vld [vmem:[%s1149_s21 + $0x668] sm:$0xff]  ;;  %v374_v14 = vld [vmem:[%s1149_s21 + $0x670] sm:$0xff] }
  0x8a   : > { %628 = vst [vmem:[%s1154_s24 + $0x660] sm:$0xff] %v372_v12  ;;  %629 = vst [vmem:[%s1154_s24 + $0x668] sm:$0xff] %v373_v13  ;;  %v375_v15 = vld [vmem:[%s1149_s21 + $0x678] sm:$0xff]  ;;  %v376_v16 = vld [vmem:[%s1149_s21 + $0x680] sm:$0xff] }
  0x8b   : > { %630 = vst [vmem:[%s1154_s24 + $0x670] sm:$0xff] %v374_v14  ;;  %v377_v17 = vld [vmem:[%s1149_s21 + $0x688] sm:$0xff]  ;;  %631 = vst [vmem:[%s1154_s24 + $0x678] sm:$0xff] %v375_v15  ;;  %v378_v18 = vld [vmem:[%s1149_s21 + $0x690] sm:$0xff] }
  0x8c   : > { %632 = vst [vmem:[%s1154_s24 + $0x680] sm:$0xff] %v376_v16  ;;  %633 = vst [vmem:[%s1154_s24 + $0x688] sm:$0xff] %v377_v17  ;;  %v379_v19 = vld [vmem:[%s1149_s21 + $0x698] sm:$0xff]  ;;  %v380_v20 = vld [vmem:[%s1149_s21 + $0x6a0] sm:$0xff] }
  0x8d   : > { %634 = vst [vmem:[%s1154_s24 + $0x690] sm:$0xff] %v378_v18  ;;  %635 = vst [vmem:[%s1154_s24 + $0x698] sm:$0xff] %v379_v19  ;;  %v381_v21 = vld [vmem:[%s1149_s21 + $0x6a8] sm:$0xff]  ;;  %v382_v22 = vld [vmem:[%s1149_s21 + $0x6b0] sm:$0xff] }
  0x8e   : > { %636 = vst [vmem:[%s1154_s24 + $0x6a0] sm:$0xff] %v380_v20  ;;  %v383_v23 = vld [vmem:[%s1149_s21 + $0x6b8] sm:$0xff]  ;;  %637 = vst [vmem:[%s1154_s24 + $0x6a8] sm:$0xff] %v381_v21  ;;  %v384_v24 = vld [vmem:[%s1149_s21 + $0x6c0] sm:$0xff] }
  0x8f   : > { %638 = vst [vmem:[%s1154_s24 + $0x6b0] sm:$0xff] %v382_v22  ;;  %639 = vst [vmem:[%s1154_s24 + $0x6b8] sm:$0xff] %v383_v23  ;;  %v385_v25 = vld [vmem:[%s1149_s21 + $0x6c8] sm:$0xff]  ;;  %v386_v26 = vld [vmem:[%s1149_s21 + $0x6d0] sm:$0xff] }
  0x90   : > { %640 = vst [vmem:[%s1154_s24 + $0x6c0] sm:$0xff] %v384_v24  ;;  %641 = vst [vmem:[%s1154_s24 + $0x6c8] sm:$0xff] %v385_v25  ;;  %v387_v27 = vld [vmem:[%s1149_s21 + $0x6d8] sm:$0xff]  ;;  %v388_v28 = vld [vmem:[%s1149_s21 + $0x6e0] sm:$0xff] }
  0x91   : > { %642 = vst [vmem:[%s1154_s24 + $0x6d0] sm:$0xff] %v386_v26  ;;  %v389_v29 = vld [vmem:[%s1149_s21 + $0x6e8] sm:$0xff]  ;;  %643 = vst [vmem:[%s1154_s24 + $0x6d8] sm:$0xff] %v387_v27  ;;  %v390_v30 = vld [vmem:[%s1149_s21 + $0x6f0] sm:$0xff] }
  0x92   : > { %644 = vst [vmem:[%s1154_s24 + $0x6e0] sm:$0xff] %v388_v28  ;;  %645 = vst [vmem:[%s1154_s24 + $0x6e8] sm:$0xff] %v389_v29  ;;  %v391_v31 = vld [vmem:[%s1149_s21 + $0x6f8] sm:$0xff]  ;;  %v392_v32 = vld [vmem:[%s1149_s21 + $0x700] sm:$0xff] }
  0x93   : > { %646 = vst [vmem:[%s1154_s24 + $0x6f0] sm:$0xff] %v390_v30  ;;  %647 = vst [vmem:[%s1154_s24 + $0x6f8] sm:$0xff] %v391_v31  ;;  %v393_v33 = vld [vmem:[%s1149_s21 + $0x708] sm:$0xff]  ;;  %v394_v34 = vld [vmem:[%s1149_s21 + $0x710] sm:$0xff] }
  0x94   : > { %648 = vst [vmem:[%s1154_s24 + $0x700] sm:$0xff] %v392_v32  ;;  %v395_v35 = vld [vmem:[%s1149_s21 + $0x718] sm:$0xff]  ;;  %649 = vst [vmem:[%s1154_s24 + $0x708] sm:$0xff] %v393_v33  ;;  %v396_v36 = vld [vmem:[%s1149_s21 + $0x720] sm:$0xff] }
  0x95   : > { %650 = vst [vmem:[%s1154_s24 + $0x710] sm:$0xff] %v394_v34  ;;  %651 = vst [vmem:[%s1154_s24 + $0x718] sm:$0xff] %v395_v35  ;;  %v397_v37 = vld [vmem:[%s1149_s21 + $0x728] sm:$0xff]  ;;  %v398_v38 = vld [vmem:[%s1149_s21 + $0x730] sm:$0xff] }
  0x96   : > { %652 = vst [vmem:[%s1154_s24 + $0x720] sm:$0xff] %v396_v36  ;;  %653 = vst [vmem:[%s1154_s24 + $0x728] sm:$0xff] %v397_v37  ;;  %v399_v39 = vld [vmem:[%s1149_s21 + $0x738] sm:$0xff]  ;;  %v400_v40 = vld [vmem:[%s1149_s21 + $0x740] sm:$0xff] }
  0x97   : > { %654 = vst [vmem:[%s1154_s24 + $0x730] sm:$0xff] %v398_v38  ;;  %v401_v41 = vld [vmem:[%s1149_s21 + $0x748] sm:$0xff]  ;;  %655 = vst [vmem:[%s1154_s24 + $0x738] sm:$0xff] %v399_v39  ;;  %v402_v42 = vld [vmem:[%s1149_s21 + $0x750] sm:$0xff] }
  0x98   : > { %656 = vst [vmem:[%s1154_s24 + $0x740] sm:$0xff] %v400_v40  ;;  %657 = vst [vmem:[%s1154_s24 + $0x748] sm:$0xff] %v401_v41  ;;  %v403_v43 = vld [vmem:[%s1149_s21 + $0x758] sm:$0xff]  ;;  %v404_v44 = vld [vmem:[%s1149_s21 + $0x760] sm:$0xff] }
  0x99   : > { %658 = vst [vmem:[%s1154_s24 + $0x750] sm:$0xff] %v402_v42  ;;  %659 = vst [vmem:[%s1154_s24 + $0x758] sm:$0xff] %v403_v43  ;;  %v405_v45 = vld [vmem:[%s1149_s21 + $0x768] sm:$0xff]  ;;  %v406_v46 = vld [vmem:[%s1149_s21 + $0x770] sm:$0xff] }
  0x9a   : > { %660 = vst [vmem:[%s1154_s24 + $0x760] sm:$0xff] %v404_v44  ;;  %v407_v47 = vld [vmem:[%s1149_s21 + $0x778] sm:$0xff]  ;;  %661 = vst [vmem:[%s1154_s24 + $0x768] sm:$0xff] %v405_v45  ;;  %v408_v48 = vld [vmem:[%s1149_s21 + $0x780] sm:$0xff] }
  0x9b   : > { %662 = vst [vmem:[%s1154_s24 + $0x770] sm:$0xff] %v406_v46  ;;  %663 = vst [vmem:[%s1154_s24 + $0x778] sm:$0xff] %v407_v47  ;;  %v409_v49 = vld [vmem:[%s1149_s21 + $0x788] sm:$0xff]  ;;  %v410_v50 = vld [vmem:[%s1149_s21 + $0x790] sm:$0xff] }
  0x9c   : > { %664 = vst [vmem:[%s1154_s24 + $0x780] sm:$0xff] %v408_v48  ;;  %665 = vst [vmem:[%s1154_s24 + $0x788] sm:$0xff] %v409_v49  ;;  %v411_v51 = vld [vmem:[%s1149_s21 + $0x798] sm:$0xff]  ;;  %v412_v52 = vld [vmem:[%s1149_s21 + $0x7a0] sm:$0xff] }
  0x9d   : > { %666 = vst [vmem:[%s1154_s24 + $0x790] sm:$0xff] %v410_v50  ;;  %v413_v53 = vld [vmem:[%s1149_s21 + $0x7a8] sm:$0xff]  ;;  %667 = vst [vmem:[%s1154_s24 + $0x798] sm:$0xff] %v411_v51  ;;  %v414_v54 = vld [vmem:[%s1149_s21 + $0x7b0] sm:$0xff] }
  0x9e   : > { %668 = vst [vmem:[%s1154_s24 + $0x7a0] sm:$0xff] %v412_v52  ;;  %669 = vst [vmem:[%s1154_s24 + $0x7a8] sm:$0xff] %v413_v53  ;;  %v415_v55 = vld [vmem:[%s1149_s21 + $0x7b8] sm:$0xff]  ;;  %v416_v56 = vld [vmem:[%s1149_s21 + $0x7c0] sm:$0xff] }
  0x9f   : > { %670 = vst [vmem:[%s1154_s24 + $0x7b0] sm:$0xff] %v414_v54  ;;  %671 = vst [vmem:[%s1154_s24 + $0x7b8] sm:$0xff] %v415_v55  ;;  %v417_v57 = vld [vmem:[%s1149_s21 + $0x7c8] sm:$0xff]  ;;  %v418_v58 = vld [vmem:[%s1149_s21 + $0x7d0] sm:$0xff] }
  0xa0   : > { %672 = vst [vmem:[%s1154_s24 + $0x7c0] sm:$0xff] %v416_v56  ;;  %v419_v59 = vld [vmem:[%s1149_s21 + $0x7d8] sm:$0xff]  ;;  %673 = vst [vmem:[%s1154_s24 + $0x7c8] sm:$0xff] %v417_v57  ;;  %v420_v60 = vld [vmem:[%s1149_s21 + $0x7e0] sm:$0xff] }
  0xa1   : > { %674 = vst [vmem:[%s1154_s24 + $0x7d0] sm:$0xff] %v418_v58  ;;  %675 = vst [vmem:[%s1154_s24 + $0x7d8] sm:$0xff] %v419_v59  ;;  %v421_v61 = vld [vmem:[%s1149_s21 + $0x7e8] sm:$0xff]  ;;  %v422_v62 = vld [vmem:[%s1149_s21 + $0x7f0] sm:$0xff] }
  0xa2   : > { %676 = vst [vmem:[%s1154_s24 + $0x7e0] sm:$0xff] %v420_v60  ;;  %677 = vst [vmem:[%s1154_s24 + $0x7e8] sm:$0xff] %v421_v61  ;;  %v423_v63 = vld [vmem:[%s1149_s21 + $0x7f8] sm:$0xff] }
  0xa3   : > { %678 = vst [vmem:[%s1154_s24 + $0x7f0] sm:$0xff] %v422_v62  ;;  %679 = vst [vmem:[%s1154_s24 + $0x7f8] sm:$0xff] %v423_v63 }
  0xa4 PF: > { %p1037_p11 = scmp.ne.s32.totalorder %s1144_s17, 0 }
  0xa6   : > { %683 = sbr.rel (%p1037_p11) target bundleno = 300 (0x12c), region = 32 }
  0xab   : > { %v1107_v0 = vmov 0.0  }
  0xac   : > { %684 = vst [vmem:[%s1154_s24] sm:$0xff] %v1107_v0  ;;  %685 = vst [vmem:[%s1154_s24 + $0x8] sm:$0xff] %v1107_v0 }
  0xad   : > { %686 = vst [vmem:[%s1154_s24 + $0x10] sm:$0xff] %v1107_v0  ;;  %687 = vst [vmem:[%s1154_s24 + $0x18] sm:$0xff] %v1107_v0 }
  0xae   : > { %688 = vst [vmem:[%s1154_s24 + $0x20] sm:$0xff] %v1107_v0  ;;  %689 = vst [vmem:[%s1154_s24 + $0x28] sm:$0xff] %v1107_v0 }
  0xaf   : > { %690 = vst [vmem:[%s1154_s24 + $0x30] sm:$0xff] %v1107_v0  ;;  %691 = vst [vmem:[%s1154_s24 + $0x38] sm:$0xff] %v1107_v0 }
  0xb0   : > { %692 = vst [vmem:[%s1154_s24 + $0x40] sm:$0xff] %v1107_v0  ;;  %693 = vst [vmem:[%s1154_s24 + $0x48] sm:$0xff] %v1107_v0 }
  0xb1   : > { %694 = vst [vmem:[%s1154_s24 + $0x50] sm:$0xff] %v1107_v0  ;;  %695 = vst [vmem:[%s1154_s24 + $0x58] sm:$0xff] %v1107_v0 }
  0xb2   : > { %696 = vst [vmem:[%s1154_s24 + $0x60] sm:$0xff] %v1107_v0  ;;  %697 = vst [vmem:[%s1154_s24 + $0x68] sm:$0xff] %v1107_v0 }
  0xb3   : > { %698 = vst [vmem:[%s1154_s24 + $0x70] sm:$0xff] %v1107_v0  ;;  %699 = vst [vmem:[%s1154_s24 + $0x78] sm:$0xff] %v1107_v0 }
  0xb4   : > { %700 = vst [vmem:[%s1154_s24 + $0x80] sm:$0xff] %v1107_v0  ;;  %701 = vst [vmem:[%s1154_s24 + $0x88] sm:$0xff] %v1107_v0 }
  0xb5   : > { %702 = vst [vmem:[%s1154_s24 + $0x90] sm:$0xff] %v1107_v0  ;;  %703 = vst [vmem:[%s1154_s24 + $0x98] sm:$0xff] %v1107_v0 }
  0xb6   : > { %704 = vst [vmem:[%s1154_s24 + $0xa0] sm:$0xff] %v1107_v0  ;;  %705 = vst [vmem:[%s1154_s24 + $0xa8] sm:$0xff] %v1107_v0 }
  0xb7   : > { %706 = vst [vmem:[%s1154_s24 + $0xb0] sm:$0xff] %v1107_v0  ;;  %707 = vst [vmem:[%s1154_s24 + $0xb8] sm:$0xff] %v1107_v0 }
  0xb8   : > { %708 = vst [vmem:[%s1154_s24 + $0xc0] sm:$0xff] %v1107_v0  ;;  %709 = vst [vmem:[%s1154_s24 + $0xc8] sm:$0xff] %v1107_v0 }
  0xb9   : > { %710 = vst [vmem:[%s1154_s24 + $0xd0] sm:$0xff] %v1107_v0  ;;  %711 = vst [vmem:[%s1154_s24 + $0xd8] sm:$0xff] %v1107_v0 }
  0xba   : > { %712 = vst [vmem:[%s1154_s24 + $0xe0] sm:$0xff] %v1107_v0  ;;  %713 = vst [vmem:[%s1154_s24 + $0xe8] sm:$0xff] %v1107_v0 }
  0xbb   : > { %714 = vst [vmem:[%s1154_s24 + $0xf0] sm:$0xff] %v1107_v0  ;;  %715 = vst [vmem:[%s1154_s24 + $0xf8] sm:$0xff] %v1107_v0 }
  0xbc   : > { %716 = vst [vmem:[%s1154_s24 + $0x100] sm:$0xff] %v1107_v0  ;;  %717 = vst [vmem:[%s1154_s24 + $0x108] sm:$0xff] %v1107_v0 }
  0xbd   : > { %718 = vst [vmem:[%s1154_s24 + $0x110] sm:$0xff] %v1107_v0  ;;  %719 = vst [vmem:[%s1154_s24 + $0x118] sm:$0xff] %v1107_v0 }
  0xbe   : > { %720 = vst [vmem:[%s1154_s24 + $0x120] sm:$0xff] %v1107_v0  ;;  %721 = vst [vmem:[%s1154_s24 + $0x128] sm:$0xff] %v1107_v0 }
  0xbf   : > { %722 = vst [vmem:[%s1154_s24 + $0x130] sm:$0xff] %v1107_v0  ;;  %723 = vst [vmem:[%s1154_s24 + $0x138] sm:$0xff] %v1107_v0 }
  0xc0   : > { %724 = vst [vmem:[%s1154_s24 + $0x140] sm:$0xff] %v1107_v0  ;;  %725 = vst [vmem:[%s1154_s24 + $0x148] sm:$0xff] %v1107_v0 }
  0xc1   : > { %726 = vst [vmem:[%s1154_s24 + $0x150] sm:$0xff] %v1107_v0  ;;  %727 = vst [vmem:[%s1154_s24 + $0x158] sm:$0xff] %v1107_v0 }
  0xc2   : > { %728 = vst [vmem:[%s1154_s24 + $0x160] sm:$0xff] %v1107_v0  ;;  %729 = vst [vmem:[%s1154_s24 + $0x168] sm:$0xff] %v1107_v0 }
  0xc3   : > { %730 = vst [vmem:[%s1154_s24 + $0x170] sm:$0xff] %v1107_v0  ;;  %731 = vst [vmem:[%s1154_s24 + $0x178] sm:$0xff] %v1107_v0 }
  0xc4   : > { %732 = vst [vmem:[%s1154_s24 + $0x180] sm:$0xff] %v1107_v0  ;;  %733 = vst [vmem:[%s1154_s24 + $0x188] sm:$0xff] %v1107_v0 }
  0xc5   : > { %734 = vst [vmem:[%s1154_s24 + $0x190] sm:$0xff] %v1107_v0  ;;  %735 = vst [vmem:[%s1154_s24 + $0x198] sm:$0xff] %v1107_v0 }
  0xc6   : > { %736 = vst [vmem:[%s1154_s24 + $0x1a0] sm:$0xff] %v1107_v0  ;;  %737 = vst [vmem:[%s1154_s24 + $0x1a8] sm:$0xff] %v1107_v0 }
  0xc7   : > { %738 = vst [vmem:[%s1154_s24 + $0x1b0] sm:$0xff] %v1107_v0  ;;  %739 = vst [vmem:[%s1154_s24 + $0x1b8] sm:$0xff] %v1107_v0 }
  0xc8   : > { %740 = vst [vmem:[%s1154_s24 + $0x1c0] sm:$0xff] %v1107_v0  ;;  %741 = vst [vmem:[%s1154_s24 + $0x1c8] sm:$0xff] %v1107_v0 }
  0xc9   : > { %742 = vst [vmem:[%s1154_s24 + $0x1d0] sm:$0xff] %v1107_v0  ;;  %743 = vst [vmem:[%s1154_s24 + $0x1d8] sm:$0xff] %v1107_v0 }
  0xca   : > { %744 = vst [vmem:[%s1154_s24 + $0x1e0] sm:$0xff] %v1107_v0  ;;  %745 = vst [vmem:[%s1154_s24 + $0x1e8] sm:$0xff] %v1107_v0 }
  0xcb   : > { %746 = vst [vmem:[%s1154_s24 + $0x1f0] sm:$0xff] %v1107_v0  ;;  %747 = vst [vmem:[%s1154_s24 + $0x1f8] sm:$0xff] %v1107_v0 }
  0xcc   : > { %748 = vst [vmem:[%s1154_s24 + $0x200] sm:$0xff] %v1107_v0  ;;  %749 = vst [vmem:[%s1154_s24 + $0x208] sm:$0xff] %v1107_v0 }
  0xcd   : > { %750 = vst [vmem:[%s1154_s24 + $0x210] sm:$0xff] %v1107_v0  ;;  %751 = vst [vmem:[%s1154_s24 + $0x218] sm:$0xff] %v1107_v0 }
  0xce   : > { %752 = vst [vmem:[%s1154_s24 + $0x220] sm:$0xff] %v1107_v0  ;;  %753 = vst [vmem:[%s1154_s24 + $0x228] sm:$0xff] %v1107_v0 }
  0xcf   : > { %754 = vst [vmem:[%s1154_s24 + $0x230] sm:$0xff] %v1107_v0  ;;  %755 = vst [vmem:[%s1154_s24 + $0x238] sm:$0xff] %v1107_v0 }
  0xd0   : > { %756 = vst [vmem:[%s1154_s24 + $0x240] sm:$0xff] %v1107_v0  ;;  %757 = vst [vmem:[%s1154_s24 + $0x248] sm:$0xff] %v1107_v0 }
  0xd1   : > { %758 = vst [vmem:[%s1154_s24 + $0x250] sm:$0xff] %v1107_v0  ;;  %759 = vst [vmem:[%s1154_s24 + $0x258] sm:$0xff] %v1107_v0 }
  0xd2   : > { %760 = vst [vmem:[%s1154_s24 + $0x260] sm:$0xff] %v1107_v0  ;;  %761 = vst [vmem:[%s1154_s24 + $0x268] sm:$0xff] %v1107_v0 }
  0xd3   : > { %762 = vst [vmem:[%s1154_s24 + $0x270] sm:$0xff] %v1107_v0  ;;  %763 = vst [vmem:[%s1154_s24 + $0x278] sm:$0xff] %v1107_v0 }
  0xd4   : > { %764 = vst [vmem:[%s1154_s24 + $0x280] sm:$0xff] %v1107_v0  ;;  %765 = vst [vmem:[%s1154_s24 + $0x288] sm:$0xff] %v1107_v0 }
  0xd5   : > { %766 = vst [vmem:[%s1154_s24 + $0x290] sm:$0xff] %v1107_v0  ;;  %767 = vst [vmem:[%s1154_s24 + $0x298] sm:$0xff] %v1107_v0 }
  0xd6   : > { %768 = vst [vmem:[%s1154_s24 + $0x2a0] sm:$0xff] %v1107_v0  ;;  %769 = vst [vmem:[%s1154_s24 + $0x2a8] sm:$0xff] %v1107_v0 }
  0xd7   : > { %770 = vst [vmem:[%s1154_s24 + $0x2b0] sm:$0xff] %v1107_v0  ;;  %771 = vst [vmem:[%s1154_s24 + $0x2b8] sm:$0xff] %v1107_v0 }
  0xd8   : > { %772 = vst [vmem:[%s1154_s24 + $0x2c0] sm:$0xff] %v1107_v0  ;;  %773 = vst [vmem:[%s1154_s24 + $0x2c8] sm:$0xff] %v1107_v0 }
  0xd9   : > { %774 = vst [vmem:[%s1154_s24 + $0x2d0] sm:$0xff] %v1107_v0  ;;  %775 = vst [vmem:[%s1154_s24 + $0x2d8] sm:$0xff] %v1107_v0 }
  0xda   : > { %776 = vst [vmem:[%s1154_s24 + $0x2e0] sm:$0xff] %v1107_v0  ;;  %777 = vst [vmem:[%s1154_s24 + $0x2e8] sm:$0xff] %v1107_v0 }
  0xdb   : > { %778 = vst [vmem:[%s1154_s24 + $0x2f0] sm:$0xff] %v1107_v0  ;;  %779 = vst [vmem:[%s1154_s24 + $0x2f8] sm:$0xff] %v1107_v0 }
  0xdc   : > { %780 = vst [vmem:[%s1154_s24 + $0x300] sm:$0xff] %v1107_v0  ;;  %781 = vst [vmem:[%s1154_s24 + $0x308] sm:$0xff] %v1107_v0 }
  0xdd   : > { %782 = vst [vmem:[%s1154_s24 + $0x310] sm:$0xff] %v1107_v0  ;;  %783 = vst [vmem:[%s1154_s24 + $0x318] sm:$0xff] %v1107_v0 }
  0xde   : > { %784 = vst [vmem:[%s1154_s24 + $0x320] sm:$0xff] %v1107_v0  ;;  %785 = vst [vmem:[%s1154_s24 + $0x328] sm:$0xff] %v1107_v0 }
  0xdf   : > { %786 = vst [vmem:[%s1154_s24 + $0x330] sm:$0xff] %v1107_v0  ;;  %787 = vst [vmem:[%s1154_s24 + $0x338] sm:$0xff] %v1107_v0 }
  0xe0   : > { %788 = vst [vmem:[%s1154_s24 + $0x340] sm:$0xff] %v1107_v0  ;;  %789 = vst [vmem:[%s1154_s24 + $0x348] sm:$0xff] %v1107_v0 }
  0xe1   : > { %790 = vst [vmem:[%s1154_s24 + $0x350] sm:$0xff] %v1107_v0  ;;  %791 = vst [vmem:[%s1154_s24 + $0x358] sm:$0xff] %v1107_v0 }
  0xe2   : > { %792 = vst [vmem:[%s1154_s24 + $0x360] sm:$0xff] %v1107_v0  ;;  %793 = vst [vmem:[%s1154_s24 + $0x368] sm:$0xff] %v1107_v0 }
  0xe3   : > { %794 = vst [vmem:[%s1154_s24 + $0x370] sm:$0xff] %v1107_v0  ;;  %795 = vst [vmem:[%s1154_s24 + $0x378] sm:$0xff] %v1107_v0 }
  0xe4   : > { %796 = vst [vmem:[%s1154_s24 + $0x380] sm:$0xff] %v1107_v0  ;;  %797 = vst [vmem:[%s1154_s24 + $0x388] sm:$0xff] %v1107_v0 }
  0xe5   : > { %798 = vst [vmem:[%s1154_s24 + $0x390] sm:$0xff] %v1107_v0  ;;  %799 = vst [vmem:[%s1154_s24 + $0x398] sm:$0xff] %v1107_v0 }
  0xe6   : > { %800 = vst [vmem:[%s1154_s24 + $0x3a0] sm:$0xff] %v1107_v0  ;;  %801 = vst [vmem:[%s1154_s24 + $0x3a8] sm:$0xff] %v1107_v0 }
  0xe7   : > { %802 = vst [vmem:[%s1154_s24 + $0x3b0] sm:$0xff] %v1107_v0  ;;  %803 = vst [vmem:[%s1154_s24 + $0x3b8] sm:$0xff] %v1107_v0 }
  0xe8   : > { %804 = vst [vmem:[%s1154_s24 + $0x3c0] sm:$0xff] %v1107_v0  ;;  %805 = vst [vmem:[%s1154_s24 + $0x3c8] sm:$0xff] %v1107_v0 }
  0xe9   : > { %806 = vst [vmem:[%s1154_s24 + $0x3d0] sm:$0xff] %v1107_v0  ;;  %807 = vst [vmem:[%s1154_s24 + $0x3d8] sm:$0xff] %v1107_v0 }
  0xea   : > { %808 = vst [vmem:[%s1154_s24 + $0x3e0] sm:$0xff] %v1107_v0  ;;  %809 = vst [vmem:[%s1154_s24 + $0x3e8] sm:$0xff] %v1107_v0 }
  0xeb   : > { %810 = vst [vmem:[%s1154_s24 + $0x3f0] sm:$0xff] %v1107_v0  ;;  %811 = vst [vmem:[%s1154_s24 + $0x3f8] sm:$0xff] %v1107_v0 }
  0xec   : > { %812 = vst [vmem:[%s1154_s24 + $0x400] sm:$0xff] %v1107_v0  ;;  %813 = vst [vmem:[%s1154_s24 + $0x408] sm:$0xff] %v1107_v0 }
  0xed   : > { %814 = vst [vmem:[%s1154_s24 + $0x410] sm:$0xff] %v1107_v0  ;;  %815 = vst [vmem:[%s1154_s24 + $0x418] sm:$0xff] %v1107_v0 }
  0xee   : > { %816 = vst [vmem:[%s1154_s24 + $0x420] sm:$0xff] %v1107_v0  ;;  %817 = vst [vmem:[%s1154_s24 + $0x428] sm:$0xff] %v1107_v0 }
  0xef   : > { %818 = vst [vmem:[%s1154_s24 + $0x430] sm:$0xff] %v1107_v0  ;;  %819 = vst [vmem:[%s1154_s24 + $0x438] sm:$0xff] %v1107_v0 }
  0xf0   : > { %820 = vst [vmem:[%s1154_s24 + $0x440] sm:$0xff] %v1107_v0  ;;  %821 = vst [vmem:[%s1154_s24 + $0x448] sm:$0xff] %v1107_v0 }
  0xf1   : > { %822 = vst [vmem:[%s1154_s24 + $0x450] sm:$0xff] %v1107_v0  ;;  %823 = vst [vmem:[%s1154_s24 + $0x458] sm:$0xff] %v1107_v0 }
  0xf2   : > { %824 = vst [vmem:[%s1154_s24 + $0x460] sm:$0xff] %v1107_v0  ;;  %825 = vst [vmem:[%s1154_s24 + $0x468] sm:$0xff] %v1107_v0 }
  0xf3   : > { %826 = vst [vmem:[%s1154_s24 + $0x470] sm:$0xff] %v1107_v0  ;;  %827 = vst [vmem:[%s1154_s24 + $0x478] sm:$0xff] %v1107_v0 }
  0xf4   : > { %828 = vst [vmem:[%s1154_s24 + $0x480] sm:$0xff] %v1107_v0  ;;  %829 = vst [vmem:[%s1154_s24 + $0x488] sm:$0xff] %v1107_v0 }
  0xf5   : > { %830 = vst [vmem:[%s1154_s24 + $0x490] sm:$0xff] %v1107_v0  ;;  %831 = vst [vmem:[%s1154_s24 + $0x498] sm:$0xff] %v1107_v0 }
  0xf6   : > { %832 = vst [vmem:[%s1154_s24 + $0x4a0] sm:$0xff] %v1107_v0  ;;  %833 = vst [vmem:[%s1154_s24 + $0x4a8] sm:$0xff] %v1107_v0 }
  0xf7   : > { %834 = vst [vmem:[%s1154_s24 + $0x4b0] sm:$0xff] %v1107_v0  ;;  %835 = vst [vmem:[%s1154_s24 + $0x4b8] sm:$0xff] %v1107_v0 }
  0xf8   : > { %836 = vst [vmem:[%s1154_s24 + $0x4c0] sm:$0xff] %v1107_v0  ;;  %837 = vst [vmem:[%s1154_s24 + $0x4c8] sm:$0xff] %v1107_v0 }
  0xf9   : > { %838 = vst [vmem:[%s1154_s24 + $0x4d0] sm:$0xff] %v1107_v0  ;;  %839 = vst [vmem:[%s1154_s24 + $0x4d8] sm:$0xff] %v1107_v0 }
  0xfa   : > { %840 = vst [vmem:[%s1154_s24 + $0x4e0] sm:$0xff] %v1107_v0  ;;  %841 = vst [vmem:[%s1154_s24 + $0x4e8] sm:$0xff] %v1107_v0 }
  0xfb   : > { %842 = vst [vmem:[%s1154_s24 + $0x4f0] sm:$0xff] %v1107_v0  ;;  %843 = vst [vmem:[%s1154_s24 + $0x4f8] sm:$0xff] %v1107_v0 }
  0xfc   : > { %844 = vst [vmem:[%s1154_s24 + $0x500] sm:$0xff] %v1107_v0  ;;  %845 = vst [vmem:[%s1154_s24 + $0x508] sm:$0xff] %v1107_v0 }
  0xfd   : > { %846 = vst [vmem:[%s1154_s24 + $0x510] sm:$0xff] %v1107_v0  ;;  %847 = vst [vmem:[%s1154_s24 + $0x518] sm:$0xff] %v1107_v0 }
  0xfe   : > { %848 = vst [vmem:[%s1154_s24 + $0x520] sm:$0xff] %v1107_v0  ;;  %849 = vst [vmem:[%s1154_s24 + $0x528] sm:$0xff] %v1107_v0 }
  0xff   : > { %850 = vst [vmem:[%s1154_s24 + $0x530] sm:$0xff] %v1107_v0  ;;  %851 = vst [vmem:[%s1154_s24 + $0x538] sm:$0xff] %v1107_v0 }
 0x100   : > { %852 = vst [vmem:[%s1154_s24 + $0x540] sm:$0xff] %v1107_v0  ;;  %853 = vst [vmem:[%s1154_s24 + $0x548] sm:$0xff] %v1107_v0 }
 0x101   : > { %854 = vst [vmem:[%s1154_s24 + $0x550] sm:$0xff] %v1107_v0  ;;  %855 = vst [vmem:[%s1154_s24 + $0x558] sm:$0xff] %v1107_v0 }
 0x102   : > { %856 = vst [vmem:[%s1154_s24 + $0x560] sm:$0xff] %v1107_v0  ;;  %857 = vst [vmem:[%s1154_s24 + $0x568] sm:$0xff] %v1107_v0 }
 0x103   : > { %858 = vst [vmem:[%s1154_s24 + $0x570] sm:$0xff] %v1107_v0  ;;  %859 = vst [vmem:[%s1154_s24 + $0x578] sm:$0xff] %v1107_v0 }
 0x104   : > { %860 = vst [vmem:[%s1154_s24 + $0x580] sm:$0xff] %v1107_v0  ;;  %861 = vst [vmem:[%s1154_s24 + $0x588] sm:$0xff] %v1107_v0 }
 0x105   : > { %862 = vst [vmem:[%s1154_s24 + $0x590] sm:$0xff] %v1107_v0  ;;  %863 = vst [vmem:[%s1154_s24 + $0x598] sm:$0xff] %v1107_v0 }
 0x106   : > { %864 = vst [vmem:[%s1154_s24 + $0x5a0] sm:$0xff] %v1107_v0  ;;  %865 = vst [vmem:[%s1154_s24 + $0x5a8] sm:$0xff] %v1107_v0 }
 0x107   : > { %866 = vst [vmem:[%s1154_s24 + $0x5b0] sm:$0xff] %v1107_v0  ;;  %867 = vst [vmem:[%s1154_s24 + $0x5b8] sm:$0xff] %v1107_v0 }
 0x108   : > { %868 = vst [vmem:[%s1154_s24 + $0x5c0] sm:$0xff] %v1107_v0  ;;  %869 = vst [vmem:[%s1154_s24 + $0x5c8] sm:$0xff] %v1107_v0 }
 0x109   : > { %870 = vst [vmem:[%s1154_s24 + $0x5d0] sm:$0xff] %v1107_v0  ;;  %871 = vst [vmem:[%s1154_s24 + $0x5d8] sm:$0xff] %v1107_v0 }
 0x10a   : > { %872 = vst [vmem:[%s1154_s24 + $0x5e0] sm:$0xff] %v1107_v0  ;;  %873 = vst [vmem:[%s1154_s24 + $0x5e8] sm:$0xff] %v1107_v0 }
 0x10b   : > { %874 = vst [vmem:[%s1154_s24 + $0x5f0] sm:$0xff] %v1107_v0  ;;  %875 = vst [vmem:[%s1154_s24 + $0x5f8] sm:$0xff] %v1107_v0 }
 0x10c   : > { %876 = vst [vmem:[%s1154_s24 + $0x600] sm:$0xff] %v1107_v0  ;;  %877 = vst [vmem:[%s1154_s24 + $0x608] sm:$0xff] %v1107_v0 }
 0x10d   : > { %878 = vst [vmem:[%s1154_s24 + $0x610] sm:$0xff] %v1107_v0  ;;  %879 = vst [vmem:[%s1154_s24 + $0x618] sm:$0xff] %v1107_v0 }
 0x10e   : > { %880 = vst [vmem:[%s1154_s24 + $0x620] sm:$0xff] %v1107_v0  ;;  %881 = vst [vmem:[%s1154_s24 + $0x628] sm:$0xff] %v1107_v0 }
 0x10f   : > { %882 = vst [vmem:[%s1154_s24 + $0x630] sm:$0xff] %v1107_v0  ;;  %883 = vst [vmem:[%s1154_s24 + $0x638] sm:$0xff] %v1107_v0 }
 0x110   : > { %884 = vst [vmem:[%s1154_s24 + $0x640] sm:$0xff] %v1107_v0  ;;  %885 = vst [vmem:[%s1154_s24 + $0x648] sm:$0xff] %v1107_v0 }
 0x111   : > { %886 = vst [vmem:[%s1154_s24 + $0x650] sm:$0xff] %v1107_v0  ;;  %887 = vst [vmem:[%s1154_s24 + $0x658] sm:$0xff] %v1107_v0 }
 0x112   : > { %888 = vst [vmem:[%s1154_s24 + $0x660] sm:$0xff] %v1107_v0  ;;  %889 = vst [vmem:[%s1154_s24 + $0x668] sm:$0xff] %v1107_v0 }
 0x113   : > { %890 = vst [vmem:[%s1154_s24 + $0x670] sm:$0xff] %v1107_v0  ;;  %891 = vst [vmem:[%s1154_s24 + $0x678] sm:$0xff] %v1107_v0 }
 0x114   : > { %892 = vst [vmem:[%s1154_s24 + $0x680] sm:$0xff] %v1107_v0  ;;  %893 = vst [vmem:[%s1154_s24 + $0x688] sm:$0xff] %v1107_v0 }
 0x115   : > { %894 = vst [vmem:[%s1154_s24 + $0x690] sm:$0xff] %v1107_v0  ;;  %895 = vst [vmem:[%s1154_s24 + $0x698] sm:$0xff] %v1107_v0 }
 0x116   : > { %896 = vst [vmem:[%s1154_s24 + $0x6a0] sm:$0xff] %v1107_v0  ;;  %897 = vst [vmem:[%s1154_s24 + $0x6a8] sm:$0xff] %v1107_v0 }
 0x117   : > { %898 = vst [vmem:[%s1154_s24 + $0x6b0] sm:$0xff] %v1107_v0  ;;  %899 = vst [vmem:[%s1154_s24 + $0x6b8] sm:$0xff] %v1107_v0 }
 0x118   : > { %900 = vst [vmem:[%s1154_s24 + $0x6c0] sm:$0xff] %v1107_v0  ;;  %901 = vst [vmem:[%s1154_s24 + $0x6c8] sm:$0xff] %v1107_v0 }
 0x119   : > { %902 = vst [vmem:[%s1154_s24 + $0x6d0] sm:$0xff] %v1107_v0  ;;  %903 = vst [vmem:[%s1154_s24 + $0x6d8] sm:$0xff] %v1107_v0 }
 0x11a   : > { %904 = vst [vmem:[%s1154_s24 + $0x6e0] sm:$0xff] %v1107_v0  ;;  %905 = vst [vmem:[%s1154_s24 + $0x6e8] sm:$0xff] %v1107_v0 }
 0x11b   : > { %906 = vst [vmem:[%s1154_s24 + $0x6f0] sm:$0xff] %v1107_v0  ;;  %907 = vst [vmem:[%s1154_s24 + $0x6f8] sm:$0xff] %v1107_v0 }
 0x11c   : > { %908 = vst [vmem:[%s1154_s24 + $0x700] sm:$0xff] %v1107_v0  ;;  %909 = vst [vmem:[%s1154_s24 + $0x708] sm:$0xff] %v1107_v0 }
 0x11d   : > { %910 = vst [vmem:[%s1154_s24 + $0x710] sm:$0xff] %v1107_v0  ;;  %911 = vst [vmem:[%s1154_s24 + $0x718] sm:$0xff] %v1107_v0 }
 0x11e   : > { %912 = vst [vmem:[%s1154_s24 + $0x720] sm:$0xff] %v1107_v0  ;;  %913 = vst [vmem:[%s1154_s24 + $0x728] sm:$0xff] %v1107_v0 }
 0x11f   : > { %914 = vst [vmem:[%s1154_s24 + $0x730] sm:$0xff] %v1107_v0  ;;  %915 = vst [vmem:[%s1154_s24 + $0x738] sm:$0xff] %v1107_v0 }
 0x120   : > { %916 = vst [vmem:[%s1154_s24 + $0x740] sm:$0xff] %v1107_v0  ;;  %917 = vst [vmem:[%s1154_s24 + $0x748] sm:$0xff] %v1107_v0 }
 0x121   : > { %918 = vst [vmem:[%s1154_s24 + $0x750] sm:$0xff] %v1107_v0  ;;  %919 = vst [vmem:[%s1154_s24 + $0x758] sm:$0xff] %v1107_v0 }
 0x122   : > { %920 = vst [vmem:[%s1154_s24 + $0x760] sm:$0xff] %v1107_v0  ;;  %921 = vst [vmem:[%s1154_s24 + $0x768] sm:$0xff] %v1107_v0 }
 0x123   : > { %922 = vst [vmem:[%s1154_s24 + $0x770] sm:$0xff] %v1107_v0  ;;  %923 = vst [vmem:[%s1154_s24 + $0x778] sm:$0xff] %v1107_v0 }
 0x124   : > { %924 = vst [vmem:[%s1154_s24 + $0x780] sm:$0xff] %v1107_v0  ;;  %925 = vst [vmem:[%s1154_s24 + $0x788] sm:$0xff] %v1107_v0 }
 0x125   : > { %926 = vst [vmem:[%s1154_s24 + $0x790] sm:$0xff] %v1107_v0  ;;  %927 = vst [vmem:[%s1154_s24 + $0x798] sm:$0xff] %v1107_v0 }
 0x126   : > { %928 = vst [vmem:[%s1154_s24 + $0x7a0] sm:$0xff] %v1107_v0  ;;  %929 = vst [vmem:[%s1154_s24 + $0x7a8] sm:$0xff] %v1107_v0 }
 0x127   : > { %930 = vst [vmem:[%s1154_s24 + $0x7b0] sm:$0xff] %v1107_v0  ;;  %931 = vst [vmem:[%s1154_s24 + $0x7b8] sm:$0xff] %v1107_v0 }
 0x128   : > { %932 = vst [vmem:[%s1154_s24 + $0x7c0] sm:$0xff] %v1107_v0  ;;  %933 = vst [vmem:[%s1154_s24 + $0x7c8] sm:$0xff] %v1107_v0 }
 0x129   : > { %934 = vst [vmem:[%s1154_s24 + $0x7d0] sm:$0xff] %v1107_v0  ;;  %935 = vst [vmem:[%s1154_s24 + $0x7d8] sm:$0xff] %v1107_v0 }
 0x12a   : > { %936 = vst [vmem:[%s1154_s24 + $0x7e0] sm:$0xff] %v1107_v0  ;;  %937 = vst [vmem:[%s1154_s24 + $0x7e8] sm:$0xff] %v1107_v0 }
 0x12b   : > { %938 = vst [vmem:[%s1154_s24 + $0x7f0] sm:$0xff] %v1107_v0  ;;  %939 = vst [vmem:[%s1154_s24 + $0x7f8] sm:$0xff] %v1107_v0 }
 0x12c PF: > { %s18_s16 = sadd.s32 1, %s1104_s16   ;;  %s2194_s14 = smov %s1100_s15 }
 0x12d   : > { %p15_p12 = scmp.ge.s32.totalorder %s18_s16, 4   ;;  %s2195_s15 = smov %s2197_s0 }
 0x12f   :  { %17 = sbr.rel (!%p15_p12) target bundleno = 17 (0x11), region = 62 }

</bundles_post_ra>
